<compile_context>
chip_gen: v7x
topology: tpu7x:2x2x1
jax: 0.10.0
libtpu: 0.0.40
codegen_flags: <defaults>
</compile_context>

<pallas_src>
import math
import functools

import numpy as np
import jax
import jax.numpy as jnp
from jax import lax
from jax.experimental import pallas as pl
from jax.experimental.pallas import tpu as pltpu


def _target_rows():
    """Rows per tile: 128 on v5e (128-wide MXU), 256 on v6e/v7x (256-wide)."""
    try:
        kind = jax.devices()[0].device_kind.lower()
    except Exception:
        return 128
    if ("v6" in kind) or ("v7" in kind) or ("tpu7" in kind):
        return 256
    return 128


# ----------------------------- kernel helpers -----------------------------

def _layer_norm(x, g, b, eps=1e-5):
    mu = jnp.mean(x, axis=-1, keepdims=True)
    var = jnp.mean((x - mu) ** 2, axis=-1, keepdims=True)
    return (x - mu) * jax.lax.rsqrt(var + eps) * g + b


def sakt_kernel(n, d, n_heads, bb,
                e_ref, m_ref, pos_ref, mask_ref,
                wq_ref, wkv_ref, wo_ref,
                w1_ref, w2_ref, wp_ref,
                bias_ref,
                p_out_ref, attn_out_ref):
    rows = bb * n
    hd = d // n_heads
    bf16 = jnp.bfloat16

    # Packed biases / LN params (one DMA):
    #   0: bq (pre-scaled by 1/sqrt(hd))   1: bk   2: bv   3: bo
    #   4: g1  5: beta1   6: bf1  7: bf2   8: g2  9: beta2  10: bp (scalar)
    bq = bias_ref[0:1, :]
    bk = bias_ref[1:2, :]
    bv = bias_ref[2:3, :]
    bo = bias_ref[3:4, :]
    g1 = bias_ref[4:5, :]
    beta1 = bias_ref[5:6, :]
    bf1 = bias_ref[6:7, :]
    bf2 = bias_ref[7:8, :]
    g2 = bias_ref[8:9, :]
    beta2 = bias_ref[9:10, :]
    bp = bias_ref[10:11, 0:1]                    # (1, 1)

    # Residual-path activations stay f32.
    e = e_ref[...]                               # (rows, d)
    m = m_ref[...] + pos_ref[...]                # (rows, d)  M(x) + positional P
    mask = mask_ref[...]                         # (rows, rows) additive 0 / -1e30

    e_b = e.astype(bf16)
    m_b = m.astype(bf16)

    # Full-width in-projections: Q (scale folded into weights) and fused K|V.
    q_full = jnp.dot(e_b, wq_ref[...], preferred_element_type=jnp.float32) + bq
    kv = jnp.dot(m_b, wkv_ref[...], preferred_element_type=jnp.float32)     # (rows, 2d)
    k_full = kv[:, :d] + bk
    v_full = kv[:, d:] + bv

    q_b = q_full.astype(bf16)
    k_b = k_full.astype(bf16)
    v_b = v_full.astype(bf16)

    # Per-head attention, one head at a time (static unrolled loop); the output
    # projection is accumulated per head into a full-width (rows, d) slab.
    aw_acc = jnp.zeros((rows, rows), jnp.float32)
    s = jnp.zeros((rows, d), jnp.float32)
    for h in range(n_heads):
        lo, hi = h * hd, (h + 1) * hd
        qh = q_b[:, lo:hi]                       # (rows, hd)
        kh = k_b[:, lo:hi]
        vh = v_b[:, lo:hi]
        # scores = qh @ kh^T (rhs-contraction dot, no explicit transpose)
        sc = lax.dot_general(qh, kh, (((1,), (1,)), ((), ())),
                             preferred_element_type=jnp.float32) + mask
        sc = sc - jnp.max(sc, axis=-1, keepdims=True)
        pe = jnp.exp(sc)
        inv = pl.reciprocal(jnp.sum(pe, axis=-1, keepdims=True), approx=True)
        aw = pe * inv                            # (rows, rows)
        aw_acc = aw_acc + aw
        ctx_h = jnp.dot(aw.astype(bf16), vh,
                        preferred_element_type=jnp.float32)                 # (rows, hd)
        s = s + jnp.dot(ctx_h.astype(bf16), wo_ref[h],
                        preferred_element_type=jnp.float32)                 # (rows, d)

    s = s + bo
    s = _layer_norm(s + m + e, g1, beta1)

    # FFN: Linear -> ReLU -> Linear (dropouts identity in eval).
    f = jnp.maximum(
        jnp.dot(s.astype(bf16), w1_ref[...],
                preferred_element_type=jnp.float32) + bf1, 0.0)
    f = jnp.dot(f.astype(bf16), w2_ref[...],
                preferred_element_type=jnp.float32) + bf2
    f = _layer_norm(f + s, g2, beta2)

    # Prediction head: produce a lane-dense (1, rows) row directly
    # (wp_row @ f^T via rhs-contraction), sigmoid, store as (1, 1, rows).
    logits = lax.dot_general(wp_ref[...], f.astype(bf16), (((1,), (1,)), ((), ())),
                             preferred_element_type=jnp.float32) + bp       # (1, rows)
    p_out_ref[...] = jax.nn.sigmoid(logits).reshape(1, 1, rows)

    # Head-averaged attention: write only the per-batch diagonal n x n blocks.
    aw_avg = aw_acc * (1.0 / n_heads)
    for b in range(bb):
        attn_out_ref[b] = aw_avg[b * n:(b + 1) * n, b * n:(b + 1) * n]


# ------------------------------ wrapper (glue) ------------------------------

def _choose_tile(B, n, target_rows, min_tiles=2):
    # bb batch elements per tile; rows = bb * n close to target_rows.
    bb = max(1, min(B, max(1, target_rows // n)))
    # Expose >= min_tiles grid steps when the batch permits (v7x: 2 TensorCores).
    if B >= min_tiles:
        bb = min(bb, max(1, B // min_tiles))
    # Row-tile alignment: rows must be a multiple of 8 unless the single tile
    # covers the full array.
    if bb < B:
        while bb > 1 and (bb * n) % 8 != 0:
            bb -= 1
        if (bb * n) % 8 != 0:
            bb = B                     # fall back to a single full-extent tile
    if bb >= B:
        bb = B
    B_pad = ((B + bb - 1) // bb) * bb
    return bb, B_pad


def sakt_forward(params, q, r, qry):
    num_q = params["num_q"]
    n_heads = params["n_heads"]
    B, n = q.shape
    d = params["M"].shape[1]
    hd = d // n_heads
    scale = 1.0 / math.sqrt(hd)
    bf16 = jnp.bfloat16

    bb, B_pad = _choose_tile(B, n, _target_rows())
    rows = bb * n
    num_tiles = B_pad // bb

    # Embedding lookups (glue, plain JAX gathers), flattened to (B_pad*n, d).
    x = q + num_q * r
    M_emb = params["M"][x]        # (B, n, d)
    E_emb = params["E"][qry]      # (B, n, d)
    if B_pad > B:
        pad = jnp.zeros((B_pad - B, n, d), M_emb.dtype)
        M_emb = jnp.concatenate([M_emb, pad], axis=0)
        E_emb = jnp.concatenate([E_emb, pad], axis=0)
    M_flat = M_emb.reshape(B_pad * n, d)
    E_flat = E_emb.reshape(B_pad * n, d)

    # Positional embedding tiled once per row tile (same for every tile).
    P_tile = jnp.tile(params["P"], (bb, 1))                        # (rows, d)

    # Additive block-diagonal causal mask: 0 where (same batch elem & key<=query).
    ridx = np.arange(rows)
    blk = ridx // n
    allowed = (blk[:, None] == blk[None, :]) & (ridx[None, :] <= ridx[:, None])
    mask_add = jnp.asarray(np.where(allowed, 0.0, -1e30), dtype=jnp.float32)

    # Weights: full-width Q (scale folded in), fused K|V, per-head Wo, FFN, pred.
    wq_b = (params["wq"] * scale).astype(bf16)                     # (d, d)
    wkv_b = jnp.concatenate([params["wk"], params["wv"]], axis=1).astype(bf16)  # (d, 2d)
    wo3 = params["wo"].reshape(n_heads, hd, d).astype(bf16)        # (H, hd, d)
    w1_b = params["w1"].astype(bf16)
    w2_b = params["w2"].astype(bf16)
    wp_row = params["wp"].reshape(1, d).astype(bf16)               # (1, d)

    # Packed biases / LN params: one (11, d) f32 array (single DMA).
    biases = jnp.concatenate([
        params["bq"] * scale,                                      # 0
        params["bk"], params["bv"], params["bo"],                  # 1, 2, 3
        params["g1"], params["b1"],                                # 4, 5
        params["bf1"], params["bf2"],                              # 6, 7
        params["g2"], params["b2"],                                # 8, 9
        jnp.broadcast_to(params["bp"], (1, d)),                    # 10 ([0,0] used)
    ], axis=0).astype(jnp.float32)

    kern = functools.partial(sakt_kernel, n, d, n_heads, bb)

    def full_spec(shape):
        nd = len(shape)
        return pl.BlockSpec(shape, lambda i, nd=nd: (0,) * nd)

    in_specs = [
        pl.BlockSpec((rows, d), lambda i: (i, 0)),      # E (flattened rows)
        pl.BlockSpec((rows, d), lambda i: (i, 0)),      # M (flattened rows)
        full_spec((rows, d)),                           # positional P (tiled)
        full_spec((rows, rows)),                        # additive causal mask
        full_spec((d, d)),                              # wq (scaled, bf16)
        full_spec((d, 2 * d)),                          # fused wk|wv (bf16)
        full_spec((n_heads, hd, d)),                    # wo per head (bf16)
        full_spec((d, d)),                              # FFN w1
        full_spec((d, d)),                              # FFN w2
        full_spec((1, d)),                              # pred wp as row
        full_spec((11, d)),                             # packed biases / LN
    ]
    out_specs = [
        pl.BlockSpec((1, 1, rows), lambda i: (i, 0, 0)),        # p (lane-dense row)
        pl.BlockSpec((bb, n, n), lambda i: (i, 0, 0)),          # attn diag blocks
    ]
    out_shape = [
        jax.ShapeDtypeStruct((num_tiles, 1, rows), jnp.float32),
        jax.ShapeDtypeStruct((B_pad, n, n), jnp.float32),
    ]

    p_rows, attn_full = pl.pallas_call(
        kern,
        grid=(num_tiles,),
        in_specs=in_specs,
        out_specs=out_specs,
        out_shape=out_shape,
        compiler_params=pltpu.CompilerParams(dimension_semantics=("parallel",)),
    )(E_flat, M_flat, P_tile, mask_add,
      wq_b, wkv_b, wo3, w1_b, w2_b, wp_row, biases)

    p = p_rows.reshape(B_pad, n)[:B]          # (B, n)
    attn = attn_full[:B]                      # (B, n, n)
    return p, attn


# --------------------------- pure-JAX reference ---------------------------

def sakt_reference(params, q, r, qry):
    num_q = params["num_q"]
    n_heads = params["n_heads"]
    x = q + num_q * r
    M = params["M"][x] + params["P"][None]     # (B, n, d)
    E = params["E"][qry]                       # (B, n, d)
    B, n, d = M.shape
    hd = d // n_heads

    Q = jnp.einsum("bnd,de->bne", E, params["wq"]) + params["bq"]
    K = jnp.einsum("bnd,de->bne", M, params["wk"]) + params["bk"]
    V = jnp.einsum("bnd,de->bne", M, params["wv"]) + params["bv"]
    Qh = Q.reshape(B, n, n_heads, hd).transpose(0, 2, 1, 3)
    Kh = K.reshape(B, n, n_heads, hd).transpose(0, 2, 1, 3)
    Vh = V.reshape(B, n, n_heads, hd).transpose(0, 2, 1, 3)
    sc = jnp.einsum("bhqe,bhke->bhqk", Qh, Kh) / math.sqrt(hd)
    mask = jnp.triu(jnp.ones((n, n), dtype=bool), k=1)
    sc = jnp.where(mask, -1e30, sc)
    aw = jax.nn.softmax(sc, axis=-1)
    ctx = jnp.einsum("bhqk,bhke->bhqe", aw, Vh).transpose(0, 2, 1, 3).reshape(B, n, d)
    S = jnp.einsum("bnd,de->bne", ctx, params["wo"]) + params["bo"]
    S = _layer_norm(S + M + E, params["g1"], params["b1"])
    F = jnp.maximum(jnp.einsum("bnd,de->bne", S, params["w1"]) + params["bf1"], 0.0)
    F = jnp.einsum("bnd,de->bne", F, params["w2"]) + params["bf2"]
    F = _layer_norm(F + S, params["g2"], params["b2"])
    p = jax.nn.sigmoid(jnp.einsum("bnd,do->bno", F, params["wp"]) + params["bp"])[..., 0]
    return p, aw.mean(axis=1)


# ---------------------------------- main ----------------------------------

if __name__ == "__main__":
    num_q = 10     # number_questions
    B = 2          # batch
    n = 8          # sequence length
    d = 32         # hidden dim
    n_heads = 4    # attention heads

    key = jax.random.PRNGKey(0)
    keys = jax.random.split(key, 16)

    def nrm(k, shape, scale=0.1):
        return (scale * jax.random.normal(k, shape)).astype(jnp.float32)

    params = {
        "num_q": num_q,
        "n_heads": n_heads,
        "M": nrm(keys[0], (num_q * 2, d)),        # Embedding(2*num_q, d)
        "E": nrm(keys[1], (num_q, d)),            # Embedding(num_q, d)
        "P": nrm(keys[2], (n, d), math.sqrt(2.0 / d)),   # kaiming-like positional
        # MHA in/out projections, pre-transposed to [in, out]
        "wq": nrm(keys[3], (d, d)), "bq": jnp.zeros((1, d), jnp.float32),
        "wk": nrm(keys[4], (d, d)), "bk": jnp.zeros((1, d), jnp.float32),
        "wv": nrm(keys[5], (d, d)), "bv": jnp.zeros((1, d), jnp.float32),
        "wo": nrm(keys[6], (d, d)), "bo": nrm(keys[7], (1, d), 0.01),
        # LayerNorms
        "g1": jnp.ones((1, d), jnp.float32), "b1": jnp.zeros((1, d), jnp.float32),
        "g2": jnp.ones((1, d), jnp.float32), "b2": jnp.zeros((1, d), jnp.float32),
        # FFN
        "w1": nrm(keys[8], (d, d)), "bf1": nrm(keys[9], (1, d), 0.01),
        "w2": nrm(keys[10], (d, d)), "bf2": nrm(keys[11], (1, d), 0.01),
        # prediction head
        "wp": nrm(keys[12], (d, 1)), "bp": nrm(keys[13], (1, 1), 0.01),
    }

    q = jax.random.randint(keys[14], (B, n), 0, num_q, dtype=jnp.int32)
    r = jax.random.randint(keys[15], (B, n), 0, 2, dtype=jnp.int32)
    qry = jax.random.randint(jax.random.fold_in(key, 99), (B, n), 0, num_q, dtype=jnp.int32)

    p_k, attn_k = sakt_forward(params, q, r, qry)
    p_k = jax.block_until_ready(p_k)
    attn_k = jax.block_until_ready(attn_k)

    p_r, attn_r = sakt_reference(params, q, r, qry)
    np.testing.assert_allclose(np.asarray(p_k), np.asarray(p_r), rtol=1e-2, atol=1e-2)
    np.testing.assert_allclose(np.asarray(attn_k), np.asarray(attn_r), rtol=1e-2, atol=1e-2)

    assert p_k.shape == (B, n) and attn_k.shape == (B, n, n)
    assert np.all(np.isfinite(np.asarray(p_k)))

    # TODO(synk): dropout layers (attn_dropout, FFN dropouts) are identity here
    # (inference semantics); stochastic dropout would use pltpu.prng_* if needed.
    print("KERNEL_OK")
</pallas_src>

<mosaic_0001>
module attributes {stable_mosaic.version = 11 : i64} {
  func.func @sakt_kernel(%arg0: i32, %arg1: memref<8x32xf32, #tpu.memory_space<vmem>>, %arg2: memref<8x32xf32, #tpu.memory_space<vmem>>, %arg3: memref<8x32xf32, #tpu.memory_space<vmem>>, %arg4: memref<8x8xf32, #tpu.memory_space<vmem>>, %arg5: memref<32x32xbf16, #tpu.memory_space<vmem>>, %arg6: memref<32x64xbf16, #tpu.memory_space<vmem>>, %arg7: memref<4x8x32xbf16, #tpu.memory_space<vmem>>, %arg8: memref<32x32xbf16, #tpu.memory_space<vmem>>, %arg9: memref<32x32xbf16, #tpu.memory_space<vmem>>, %arg10: memref<1x32xbf16, #tpu.memory_space<vmem>>, %arg11: memref<11x32xf32, #tpu.memory_space<vmem>>, %arg12: memref<1x1x8xf32, #tpu.memory_space<vmem>>, %arg13: memref<1x8x8xf32, #tpu.memory_space<vmem>>) attributes {dimension_semantics = [#tpu.dimension_semantics<parallel>], iteration_bounds = array<i64: 2>, scalar_prefetch = 0 : i64, scratch_operands = 0 : i64, tpu.core_type = #tpu.core_type<tc>, window_params = [{transform_indices = @transform_0, window_bounds = array<i64: 8, 32>}, {transform_indices = @transform_1, window_bounds = array<i64: 8, 32>}, {pipeline_mode = #tpu.pipeline_mode<synchronous>, transform_indices = @transform_2, window_bounds = array<i64: 8, 32>}, {pipeline_mode = #tpu.pipeline_mode<synchronous>, transform_indices = @transform_3, window_bounds = array<i64: 8, 8>}, {pipeline_mode = #tpu.pipeline_mode<synchronous>, transform_indices = @transform_4, window_bounds = array<i64: 32, 32>}, {pipeline_mode = #tpu.pipeline_mode<synchronous>, transform_indices = @transform_5, window_bounds = array<i64: 32, 64>}, {pipeline_mode = #tpu.pipeline_mode<synchronous>, transform_indices = @transform_6, window_bounds = array<i64: 4, 8, 32>}, {pipeline_mode = #tpu.pipeline_mode<synchronous>, transform_indices = @transform_7, window_bounds = array<i64: 32, 32>}, {pipeline_mode = #tpu.pipeline_mode<synchronous>, transform_indices = @transform_8, window_bounds = array<i64: 32, 32>}, {pipeline_mode = #tpu.pipeline_mode<synchronous>, transform_indices = @transform_9, window_bounds = array<i64: 1, 32>}, {pipeline_mode = #tpu.pipeline_mode<synchronous>, transform_indices = @transform_10, window_bounds = array<i64: 11, 32>}, {transform_indices = @transform_11, window_bounds = array<i64: 1, 1, 8>}, {transform_indices = @transform_12, window_bounds = array<i64: 1, 8, 8>}]} {
    %c0 = arith.constant 0 : index
    %c0_0 = arith.constant 0 : index
    %0 = vector.load %arg11[%c0, %c0_0] : memref<11x32xf32, #tpu.memory_space<vmem>>, vector<1x32xf32>
    %c1 = arith.constant 1 : index
    %c0_1 = arith.constant 0 : index
    %1 = vector.load %arg11[%c1, %c0_1] : memref<11x32xf32, #tpu.memory_space<vmem>>, vector<1x32xf32>
    %c2 = arith.constant 2 : index
    %c0_2 = arith.constant 0 : index
    %2 = vector.load %arg11[%c2, %c0_2] : memref<11x32xf32, #tpu.memory_space<vmem>>, vector<1x32xf32>
    %c3 = arith.constant 3 : index
    %c0_3 = arith.constant 0 : index
    %3 = vector.load %arg11[%c3, %c0_3] : memref<11x32xf32, #tpu.memory_space<vmem>>, vector<1x32xf32>
    %c4 = arith.constant 4 : index
    %c0_4 = arith.constant 0 : index
    %4 = vector.load %arg11[%c4, %c0_4] : memref<11x32xf32, #tpu.memory_space<vmem>>, vector<1x32xf32>
    %c5 = arith.constant 5 : index
    %c0_5 = arith.constant 0 : index
    %5 = vector.load %arg11[%c5, %c0_5] : memref<11x32xf32, #tpu.memory_space<vmem>>, vector<1x32xf32>
    %c6 = arith.constant 6 : index
    %c0_6 = arith.constant 0 : index
    %6 = vector.load %arg11[%c6, %c0_6] : memref<11x32xf32, #tpu.memory_space<vmem>>, vector<1x32xf32>
    %c7 = arith.constant 7 : index
    %c0_7 = arith.constant 0 : index
    %7 = vector.load %arg11[%c7, %c0_7] : memref<11x32xf32, #tpu.memory_space<vmem>>, vector<1x32xf32>
    %c8 = arith.constant 8 : index
    %c0_8 = arith.constant 0 : index
    %8 = vector.load %arg11[%c8, %c0_8] : memref<11x32xf32, #tpu.memory_space<vmem>>, vector<1x32xf32>
    %c9 = arith.constant 9 : index
    %c0_9 = arith.constant 0 : index
    %9 = vector.load %arg11[%c9, %c0_9] : memref<11x32xf32, #tpu.memory_space<vmem>>, vector<1x32xf32>
    %c10 = arith.constant 10 : index
    %c0_10 = arith.constant 0 : index
    %10 = vector.load %arg11[%c10, %c0_10] : memref<11x32xf32, #tpu.memory_space<vmem>>, vector<1x1xf32>
    %c0_11 = arith.constant 0 : index
    %c0_12 = arith.constant 0 : index
    %11 = vector.load %arg1[%c0_11, %c0_12] : memref<8x32xf32, #tpu.memory_space<vmem>>, vector<8x32xf32>
    %c0_13 = arith.constant 0 : index
    %c0_14 = arith.constant 0 : index
    %12 = vector.load %arg2[%c0_13, %c0_14] : memref<8x32xf32, #tpu.memory_space<vmem>>, vector<8x32xf32>
    %c0_15 = arith.constant 0 : index
    %c0_16 = arith.constant 0 : index
    %13 = vector.load %arg3[%c0_15, %c0_16] : memref<8x32xf32, #tpu.memory_space<vmem>>, vector<8x32xf32>
    %14 = arith.addf %12, %13 : vector<8x32xf32>
    %c0_17 = arith.constant 0 : index
    %c0_18 = arith.constant 0 : index
    %15 = vector.load %arg4[%c0_17, %c0_18] : memref<8x8xf32, #tpu.memory_space<vmem>>, vector<8x8xf32>
    %16 = arith.truncf %11 : vector<8x32xf32> to vector<8x32xbf16>
    %17 = arith.truncf %14 : vector<8x32xf32> to vector<8x32xbf16>
    %c0_19 = arith.constant 0 : index
    %c0_20 = arith.constant 0 : index
    %18 = vector.load %arg5[%c0_19, %c0_20] : memref<32x32xbf16, #tpu.memory_space<vmem>>, vector<32x32xbf16>
    %cst = arith.constant dense<0.000000e+00> : vector<8x32xf32>
    %19 = tpu.matmul %16, %18, %cst {dimension_numbers = #tpu.dot_dimension_numbers<[1], [0], [0], [1], [0, 0, 1, 1], [], []>} : vector<8x32xbf16>, vector<32x32xbf16>, vector<8x32xf32> -> vector<8x32xf32>
    %20 = vector.broadcast %0 : vector<1x32xf32> to vector<8x32xf32>
    %21 = arith.addf %19, %20 : vector<8x32xf32>
    %c0_21 = arith.constant 0 : index
    %c0_22 = arith.constant 0 : index
    %22 = vector.load %arg6[%c0_21, %c0_22] : memref<32x64xbf16, #tpu.memory_space<vmem>>, vector<32x64xbf16>
    %cst_23 = arith.constant dense<0.000000e+00> : vector<8x64xf32>
    %23 = tpu.matmul %17, %22, %cst_23 {dimension_numbers = #tpu.dot_dimension_numbers<[1], [0], [0], [1], [0, 0, 1, 1], [], []>} : vector<8x32xbf16>, vector<32x64xbf16>, vector<8x64xf32> -> vector<8x64xf32>
    %24 = vector.extract_strided_slice %23 {offsets = [0, 0], sizes = [8, 32], strides = [1, 1]} : vector<8x64xf32> to vector<8x32xf32>
    %25 = vector.broadcast %1 : vector<1x32xf32> to vector<8x32xf32>
    %26 = arith.addf %24, %25 : vector<8x32xf32>
    %27 = vector.extract_strided_slice %23 {offsets = [0, 32], sizes = [8, 32], strides = [1, 1]} : vector<8x64xf32> to vector<8x32xf32>
    %28 = vector.broadcast %2 : vector<1x32xf32> to vector<8x32xf32>
    %29 = arith.addf %27, %28 : vector<8x32xf32>
    %30 = arith.truncf %21 : vector<8x32xf32> to vector<8x32xbf16>
    %31 = arith.truncf %26 : vector<8x32xf32> to vector<8x32xbf16>
    %32 = arith.truncf %29 : vector<8x32xf32> to vector<8x32xbf16>
    %cst_24 = arith.constant 0.000000e+00 : f32
    %33 = vector.broadcast %cst_24 : f32 to vector<8x8xf32>
    %cst_25 = arith.constant 0.000000e+00 : f32
    %34 = vector.broadcast %cst_25 : f32 to vector<8x32xf32>
    %35 = vector.extract_strided_slice %30 {offsets = [0, 0], sizes = [8, 8], strides = [1, 1]} : vector<8x32xbf16> to vector<8x8xbf16>
    %36 = vector.extract_strided_slice %31 {offsets = [0, 0], sizes = [8, 8], strides = [1, 1]} : vector<8x32xbf16> to vector<8x8xbf16>
    %37 = vector.extract_strided_slice %32 {offsets = [0, 0], sizes = [8, 8], strides = [1, 1]} : vector<8x32xbf16> to vector<8x8xbf16>
    %cst_26 = arith.constant dense<0.000000e+00> : vector<8x8xf32>
    %38 = tpu.matmul %35, %36, %cst_26 {dimension_numbers = #tpu.dot_dimension_numbers<[1], [1], [0], [0], [0, 0, 1, 0], [], []>} : vector<8x8xbf16>, vector<8x8xbf16>, vector<8x8xf32> -> vector<8x8xf32>
    %39 = arith.addf %38, %15 : vector<8x8xf32>
    %cst_27 = arith.constant dense<0xFF800000> : vector<8xf32>
    %40 = vector.multi_reduction <maximumf>, %39, %cst_27 [1] : vector<8x8xf32> to vector<8xf32>
    %41 = vector.shape_cast %40 : vector<8xf32> to vector<8x1xf32>
    %42 = vector.broadcast %41 : vector<8x1xf32> to vector<8x8xf32>
    %43 = arith.subf %39, %42 : vector<8x8xf32>
    %44 = math.exp %43 : vector<8x8xf32>
    %cst_28 = arith.constant dense<0.000000e+00> : vector<8xf32>
    %45 = vector.multi_reduction <add>, %44, %cst_28 [1] : vector<8x8xf32> to vector<8xf32>
    %46 = vector.shape_cast %45 : vector<8xf32> to vector<8x1xf32>
    %47 = tpu.reciprocal %46 {approx = true} : vector<8x1xf32> -> vector<8x1xf32>
    %48 = vector.broadcast %47 : vector<8x1xf32> to vector<8x8xf32>
    %49 = arith.mulf %44, %48 : vector<8x8xf32>
    %50 = arith.addf %33, %49 : vector<8x8xf32>
    %51 = arith.truncf %49 : vector<8x8xf32> to vector<8x8xbf16>
    %cst_29 = arith.constant dense<0.000000e+00> : vector<8x8xf32>
    %52 = tpu.matmul %51, %37, %cst_29 {dimension_numbers = #tpu.dot_dimension_numbers<[1], [0], [0], [1], [0, 0, 1, 1], [], []>} : vector<8x8xbf16>, vector<8x8xbf16>, vector<8x8xf32> -> vector<8x8xf32>
    %53 = arith.truncf %52 : vector<8x8xf32> to vector<8x8xbf16>
    %c0_30 = arith.constant 0 : index
    %c0_31 = arith.constant 0 : index
    %c0_32 = arith.constant 0 : index
    %54 = vector.load %arg7[%c0_30, %c0_31, %c0_32] : memref<4x8x32xbf16, #tpu.memory_space<vmem>>, vector<1x8x32xbf16>
    %55 = vector.shape_cast %54 : vector<1x8x32xbf16> to vector<8x32xbf16>
    %cst_33 = arith.constant dense<0.000000e+00> : vector<8x32xf32>
    %56 = tpu.matmul %53, %55, %cst_33 {dimension_numbers = #tpu.dot_dimension_numbers<[1], [0], [0], [1], [0, 0, 1, 1], [], []>} : vector<8x8xbf16>, vector<8x32xbf16>, vector<8x32xf32> -> vector<8x32xf32>
    %57 = arith.addf %34, %56 : vector<8x32xf32>
    %58 = vector.extract_strided_slice %30 {offsets = [0, 8], sizes = [8, 8], strides = [1, 1]} : vector<8x32xbf16> to vector<8x8xbf16>
    %59 = vector.extract_strided_slice %31 {offsets = [0, 8], sizes = [8, 8], strides = [1, 1]} : vector<8x32xbf16> to vector<8x8xbf16>
    %60 = vector.extract_strided_slice %32 {offsets = [0, 8], sizes = [8, 8], strides = [1, 1]} : vector<8x32xbf16> to vector<8x8xbf16>
    %cst_34 = arith.constant dense<0.000000e+00> : vector<8x8xf32>
    %61 = tpu.matmul %58, %59, %cst_34 {dimension_numbers = #tpu.dot_dimension_numbers<[1], [1], [0], [0], [0, 0, 1, 0], [], []>} : vector<8x8xbf16>, vector<8x8xbf16>, vector<8x8xf32> -> vector<8x8xf32>
    %62 = arith.addf %61, %15 : vector<8x8xf32>
    %cst_35 = arith.constant dense<0xFF800000> : vector<8xf32>
    %63 = vector.multi_reduction <maximumf>, %62, %cst_35 [1] : vector<8x8xf32> to vector<8xf32>
    %64 = vector.shape_cast %63 : vector<8xf32> to vector<8x1xf32>
    %65 = vector.broadcast %64 : vector<8x1xf32> to vector<8x8xf32>
    %66 = arith.subf %62, %65 : vector<8x8xf32>
    %67 = math.exp %66 : vector<8x8xf32>
    %cst_36 = arith.constant dense<0.000000e+00> : vector<8xf32>
    %68 = vector.multi_reduction <add>, %67, %cst_36 [1] : vector<8x8xf32> to vector<8xf32>
    %69 = vector.shape_cast %68 : vector<8xf32> to vector<8x1xf32>
    %70 = tpu.reciprocal %69 {approx = true} : vector<8x1xf32> -> vector<8x1xf32>
    %71 = vector.broadcast %70 : vector<8x1xf32> to vector<8x8xf32>
    %72 = arith.mulf %67, %71 : vector<8x8xf32>
    %73 = arith.addf %50, %72 : vector<8x8xf32>
    %74 = arith.truncf %72 : vector<8x8xf32> to vector<8x8xbf16>
    %cst_37 = arith.constant dense<0.000000e+00> : vector<8x8xf32>
    %75 = tpu.matmul %74, %60, %cst_37 {dimension_numbers = #tpu.dot_dimension_numbers<[1], [0], [0], [1], [0, 0, 1, 1], [], []>} : vector<8x8xbf16>, vector<8x8xbf16>, vector<8x8xf32> -> vector<8x8xf32>
    %76 = arith.truncf %75 : vector<8x8xf32> to vector<8x8xbf16>
    %c1_38 = arith.constant 1 : index
    %c0_39 = arith.constant 0 : index
    %c0_40 = arith.constant 0 : index
    %77 = vector.load %arg7[%c1_38, %c0_39, %c0_40] : memref<4x8x32xbf16, #tpu.memory_space<vmem>>, vector<1x8x32xbf16>
    %78 = vector.shape_cast %77 : vector<1x8x32xbf16> to vector<8x32xbf16>
    %cst_41 = arith.constant dense<0.000000e+00> : vector<8x32xf32>
    %79 = tpu.matmul %76, %78, %cst_41 {dimension_numbers = #tpu.dot_dimension_numbers<[1], [0], [0], [1], [0, 0, 1, 1], [], []>} : vector<8x8xbf16>, vector<8x32xbf16>, vector<8x32xf32> -> vector<8x32xf32>
    %80 = arith.addf %57, %79 : vector<8x32xf32>
    %81 = vector.extract_strided_slice %30 {offsets = [0, 16], sizes = [8, 8], strides = [1, 1]} : vector<8x32xbf16> to vector<8x8xbf16>
    %82 = vector.extract_strided_slice %31 {offsets = [0, 16], sizes = [8, 8], strides = [1, 1]} : vector<8x32xbf16> to vector<8x8xbf16>
    %83 = vector.extract_strided_slice %32 {offsets = [0, 16], sizes = [8, 8], strides = [1, 1]} : vector<8x32xbf16> to vector<8x8xbf16>
    %cst_42 = arith.constant dense<0.000000e+00> : vector<8x8xf32>
    %84 = tpu.matmul %81, %82, %cst_42 {dimension_numbers = #tpu.dot_dimension_numbers<[1], [1], [0], [0], [0, 0, 1, 0], [], []>} : vector<8x8xbf16>, vector<8x8xbf16>, vector<8x8xf32> -> vector<8x8xf32>
    %85 = arith.addf %84, %15 : vector<8x8xf32>
    %cst_43 = arith.constant dense<0xFF800000> : vector<8xf32>
    %86 = vector.multi_reduction <maximumf>, %85, %cst_43 [1] : vector<8x8xf32> to vector<8xf32>
    %87 = vector.shape_cast %86 : vector<8xf32> to vector<8x1xf32>
    %88 = vector.broadcast %87 : vector<8x1xf32> to vector<8x8xf32>
    %89 = arith.subf %85, %88 : vector<8x8xf32>
    %90 = math.exp %89 : vector<8x8xf32>
    %cst_44 = arith.constant dense<0.000000e+00> : vector<8xf32>
    %91 = vector.multi_reduction <add>, %90, %cst_44 [1] : vector<8x8xf32> to vector<8xf32>
    %92 = vector.shape_cast %91 : vector<8xf32> to vector<8x1xf32>
    %93 = tpu.reciprocal %92 {approx = true} : vector<8x1xf32> -> vector<8x1xf32>
    %94 = vector.broadcast %93 : vector<8x1xf32> to vector<8x8xf32>
    %95 = arith.mulf %90, %94 : vector<8x8xf32>
    %96 = arith.addf %73, %95 : vector<8x8xf32>
    %97 = arith.truncf %95 : vector<8x8xf32> to vector<8x8xbf16>
    %cst_45 = arith.constant dense<0.000000e+00> : vector<8x8xf32>
    %98 = tpu.matmul %97, %83, %cst_45 {dimension_numbers = #tpu.dot_dimension_numbers<[1], [0], [0], [1], [0, 0, 1, 1], [], []>} : vector<8x8xbf16>, vector<8x8xbf16>, vector<8x8xf32> -> vector<8x8xf32>
    %99 = arith.truncf %98 : vector<8x8xf32> to vector<8x8xbf16>
    %c2_46 = arith.constant 2 : index
    %c0_47 = arith.constant 0 : index
    %c0_48 = arith.constant 0 : index
    %100 = vector.load %arg7[%c2_46, %c0_47, %c0_48] : memref<4x8x32xbf16, #tpu.memory_space<vmem>>, vector<1x8x32xbf16>
    %101 = vector.shape_cast %100 : vector<1x8x32xbf16> to vector<8x32xbf16>
    %cst_49 = arith.constant dense<0.000000e+00> : vector<8x32xf32>
    %102 = tpu.matmul %99, %101, %cst_49 {dimension_numbers = #tpu.dot_dimension_numbers<[1], [0], [0], [1], [0, 0, 1, 1], [], []>} : vector<8x8xbf16>, vector<8x32xbf16>, vector<8x32xf32> -> vector<8x32xf32>
    %103 = arith.addf %80, %102 : vector<8x32xf32>
    %104 = vector.extract_strided_slice %30 {offsets = [0, 24], sizes = [8, 8], strides = [1, 1]} : vector<8x32xbf16> to vector<8x8xbf16>
    %105 = vector.extract_strided_slice %31 {offsets = [0, 24], sizes = [8, 8], strides = [1, 1]} : vector<8x32xbf16> to vector<8x8xbf16>
    %106 = vector.extract_strided_slice %32 {offsets = [0, 24], sizes = [8, 8], strides = [1, 1]} : vector<8x32xbf16> to vector<8x8xbf16>
    %cst_50 = arith.constant dense<0.000000e+00> : vector<8x8xf32>
    %107 = tpu.matmul %104, %105, %cst_50 {dimension_numbers = #tpu.dot_dimension_numbers<[1], [1], [0], [0], [0, 0, 1, 0], [], []>} : vector<8x8xbf16>, vector<8x8xbf16>, vector<8x8xf32> -> vector<8x8xf32>
    %108 = arith.addf %107, %15 : vector<8x8xf32>
    %cst_51 = arith.constant dense<0xFF800000> : vector<8xf32>
    %109 = vector.multi_reduction <maximumf>, %108, %cst_51 [1] : vector<8x8xf32> to vector<8xf32>
    %110 = vector.shape_cast %109 : vector<8xf32> to vector<8x1xf32>
    %111 = vector.broadcast %110 : vector<8x1xf32> to vector<8x8xf32>
    %112 = arith.subf %108, %111 : vector<8x8xf32>
    %113 = math.exp %112 : vector<8x8xf32>
    %cst_52 = arith.constant dense<0.000000e+00> : vector<8xf32>
    %114 = vector.multi_reduction <add>, %113, %cst_52 [1] : vector<8x8xf32> to vector<8xf32>
    %115 = vector.shape_cast %114 : vector<8xf32> to vector<8x1xf32>
    %116 = tpu.reciprocal %115 {approx = true} : vector<8x1xf32> -> vector<8x1xf32>
    %117 = vector.broadcast %116 : vector<8x1xf32> to vector<8x8xf32>
    %118 = arith.mulf %113, %117 : vector<8x8xf32>
    %119 = arith.addf %96, %118 : vector<8x8xf32>
    %120 = arith.truncf %118 : vector<8x8xf32> to vector<8x8xbf16>
    %cst_53 = arith.constant dense<0.000000e+00> : vector<8x8xf32>
    %121 = tpu.matmul %120, %106, %cst_53 {dimension_numbers = #tpu.dot_dimension_numbers<[1], [0], [0], [1], [0, 0, 1, 1], [], []>} : vector<8x8xbf16>, vector<8x8xbf16>, vector<8x8xf32> -> vector<8x8xf32>
    %122 = arith.truncf %121 : vector<8x8xf32> to vector<8x8xbf16>
    %c3_54 = arith.constant 3 : index
    %c0_55 = arith.constant 0 : index
    %c0_56 = arith.constant 0 : index
    %123 = vector.load %arg7[%c3_54, %c0_55, %c0_56] : memref<4x8x32xbf16, #tpu.memory_space<vmem>>, vector<1x8x32xbf16>
    %124 = vector.shape_cast %123 : vector<1x8x32xbf16> to vector<8x32xbf16>
    %cst_57 = arith.constant dense<0.000000e+00> : vector<8x32xf32>
    %125 = tpu.matmul %122, %124, %cst_57 {dimension_numbers = #tpu.dot_dimension_numbers<[1], [0], [0], [1], [0, 0, 1, 1], [], []>} : vector<8x8xbf16>, vector<8x32xbf16>, vector<8x32xf32> -> vector<8x32xf32>
    %126 = arith.addf %103, %125 : vector<8x32xf32>
    %127 = vector.broadcast %3 : vector<1x32xf32> to vector<8x32xf32>
    %128 = arith.addf %126, %127 : vector<8x32xf32>
    %129 = arith.addf %128, %14 : vector<8x32xf32>
    %130 = arith.addf %129, %11 : vector<8x32xf32>
    %cst_58 = arith.constant dense<0.000000e+00> : vector<8xf32>
    %131 = vector.multi_reduction <add>, %130, %cst_58 [1] : vector<8x32xf32> to vector<8xf32>
    %132 = vector.shape_cast %131 : vector<8xf32> to vector<8x1xf32>
    %cst_59 = arith.constant 3.200000e+01 : f32
    %133 = vector.broadcast %cst_59 : f32 to vector<8x1xf32>
    %134 = arith.divf %132, %133 : vector<8x1xf32>
    %135 = vector.broadcast %134 : vector<8x1xf32> to vector<8x32xf32>
    %136 = arith.subf %130, %135 : vector<8x32xf32>
    %137 = arith.mulf %136, %136 : vector<8x32xf32>
    %cst_60 = arith.constant dense<0.000000e+00> : vector<8xf32>
    %138 = vector.multi_reduction <add>, %137, %cst_60 [1] : vector<8x32xf32> to vector<8xf32>
    %139 = vector.shape_cast %138 : vector<8xf32> to vector<8x1xf32>
    %cst_61 = arith.constant 3.200000e+01 : f32
    %140 = vector.broadcast %cst_61 : f32 to vector<8x1xf32>
    %141 = arith.divf %139, %140 : vector<8x1xf32>
    %142 = vector.broadcast %134 : vector<8x1xf32> to vector<8x32xf32>
    %143 = arith.subf %130, %142 : vector<8x32xf32>
    %cst_62 = arith.constant 9.99999974E-6 : f32
    %144 = vector.broadcast %cst_62 : f32 to vector<8x1xf32>
    %145 = arith.addf %141, %144 : vector<8x1xf32>
    %146 = math.rsqrt %145 : vector<8x1xf32>
    %147 = vector.broadcast %146 : vector<8x1xf32> to vector<8x32xf32>
    %148 = arith.mulf %143, %147 : vector<8x32xf32>
    %149 = vector.broadcast %4 : vector<1x32xf32> to vector<8x32xf32>
    %150 = arith.mulf %148, %149 : vector<8x32xf32>
    %151 = vector.broadcast %5 : vector<1x32xf32> to vector<8x32xf32>
    %152 = arith.addf %150, %151 : vector<8x32xf32>
    %153 = arith.truncf %152 : vector<8x32xf32> to vector<8x32xbf16>
    %c0_63 = arith.constant 0 : index
    %c0_64 = arith.constant 0 : index
    %154 = vector.load %arg8[%c0_63, %c0_64] : memref<32x32xbf16, #tpu.memory_space<vmem>>, vector<32x32xbf16>
    %cst_65 = arith.constant dense<0.000000e+00> : vector<8x32xf32>
    %155 = tpu.matmul %153, %154, %cst_65 {dimension_numbers = #tpu.dot_dimension_numbers<[1], [0], [0], [1], [0, 0, 1, 1], [], []>} : vector<8x32xbf16>, vector<32x32xbf16>, vector<8x32xf32> -> vector<8x32xf32>
    %156 = vector.broadcast %6 : vector<1x32xf32> to vector<8x32xf32>
    %157 = arith.addf %155, %156 : vector<8x32xf32>
    %cst_66 = arith.constant 0.000000e+00 : f32
    %158 = vector.broadcast %cst_66 : f32 to vector<8x32xf32>
    %159 = arith.maximumf %157, %158 : vector<8x32xf32>
    %160 = arith.truncf %159 : vector<8x32xf32> to vector<8x32xbf16>
    %c0_67 = arith.constant 0 : index
    %c0_68 = arith.constant 0 : index
    %161 = vector.load %arg9[%c0_67, %c0_68] : memref<32x32xbf16, #tpu.memory_space<vmem>>, vector<32x32xbf16>
    %cst_69 = arith.constant dense<0.000000e+00> : vector<8x32xf32>
    %162 = tpu.matmul %160, %161, %cst_69 {dimension_numbers = #tpu.dot_dimension_numbers<[1], [0], [0], [1], [0, 0, 1, 1], [], []>} : vector<8x32xbf16>, vector<32x32xbf16>, vector<8x32xf32> -> vector<8x32xf32>
    %163 = vector.broadcast %7 : vector<1x32xf32> to vector<8x32xf32>
    %164 = arith.addf %162, %163 : vector<8x32xf32>
    %165 = arith.addf %164, %152 : vector<8x32xf32>
    %cst_70 = arith.constant dense<0.000000e+00> : vector<8xf32>
    %166 = vector.multi_reduction <add>, %165, %cst_70 [1] : vector<8x32xf32> to vector<8xf32>
    %167 = vector.shape_cast %166 : vector<8xf32> to vector<8x1xf32>
    %cst_71 = arith.constant 3.200000e+01 : f32
    %168 = vector.broadcast %cst_71 : f32 to vector<8x1xf32>
    %169 = arith.divf %167, %168 : vector<8x1xf32>
    %170 = vector.broadcast %169 : vector<8x1xf32> to vector<8x32xf32>
    %171 = arith.subf %165, %170 : vector<8x32xf32>
    %172 = arith.mulf %171, %171 : vector<8x32xf32>
    %cst_72 = arith.constant dense<0.000000e+00> : vector<8xf32>
    %173 = vector.multi_reduction <add>, %172, %cst_72 [1] : vector<8x32xf32> to vector<8xf32>
    %174 = vector.shape_cast %173 : vector<8xf32> to vector<8x1xf32>
    %cst_73 = arith.constant 3.200000e+01 : f32
    %175 = vector.broadcast %cst_73 : f32 to vector<8x1xf32>
    %176 = arith.divf %174, %175 : vector<8x1xf32>
    %177 = vector.broadcast %169 : vector<8x1xf32> to vector<8x32xf32>
    %178 = arith.subf %165, %177 : vector<8x32xf32>
    %cst_74 = arith.constant 9.99999974E-6 : f32
    %179 = vector.broadcast %cst_74 : f32 to vector<8x1xf32>
    %180 = arith.addf %176, %179 : vector<8x1xf32>
    %181 = math.rsqrt %180 : vector<8x1xf32>
    %182 = vector.broadcast %181 : vector<8x1xf32> to vector<8x32xf32>
    %183 = arith.mulf %178, %182 : vector<8x32xf32>
    %184 = vector.broadcast %8 : vector<1x32xf32> to vector<8x32xf32>
    %185 = arith.mulf %183, %184 : vector<8x32xf32>
    %186 = vector.broadcast %9 : vector<1x32xf32> to vector<8x32xf32>
    %187 = arith.addf %185, %186 : vector<8x32xf32>
    %c0_75 = arith.constant 0 : index
    %c0_76 = arith.constant 0 : index
    %188 = vector.load %arg10[%c0_75, %c0_76] : memref<1x32xbf16, #tpu.memory_space<vmem>>, vector<1x32xbf16>
    %189 = arith.truncf %187 : vector<8x32xf32> to vector<8x32xbf16>
    %cst_77 = arith.constant dense<0.000000e+00> : vector<1x8xf32>
    %190 = tpu.matmul %188, %189, %cst_77 {dimension_numbers = #tpu.dot_dimension_numbers<[1], [1], [0], [0], [0, 0, 1, 0], [], []>} : vector<1x32xbf16>, vector<8x32xbf16>, vector<1x8xf32> -> vector<1x8xf32>
    %191 = vector.broadcast %10 : vector<1x1xf32> to vector<1x8xf32>
    %192 = arith.addf %190, %191 : vector<1x8xf32>
    %193 = arith.negf %192 : vector<1x8xf32>
    %194 = math.exp %193 : vector<1x8xf32>
    %cst_78 = arith.constant 1.000000e+00 : f32
    %195 = vector.broadcast %cst_78 : f32 to vector<1x8xf32>
    %196 = arith.addf %195, %194 : vector<1x8xf32>
    %197 = arith.divf %195, %196 : vector<1x8xf32>
    %198 = vector.shape_cast %197 : vector<1x8xf32> to vector<1x1x8xf32>
    %c0_79 = arith.constant 0 : index
    %c0_80 = arith.constant 0 : index
    %c0_81 = arith.constant 0 : index
    %199 = vector.load %arg12[%c0_79, %c0_80, %c0_81] : memref<1x1x8xf32, #tpu.memory_space<vmem>>, vector<1x1x8xf32>
    tpu.vector_store %arg12[%c0_79, %c0_80, %c0_81], %198 {strides = array<i32>} : memref<1x1x8xf32, #tpu.memory_space<vmem>>, vector<1x1x8xf32>,
    %cst_82 = arith.constant 2.500000e-01 : f32
    %200 = vector.broadcast %cst_82 : f32 to vector<8x8xf32>
    %201 = arith.mulf %119, %200 : vector<8x8xf32>
    %c0_83 = arith.constant 0 : index
    %c0_84 = arith.constant 0 : index
    %c0_85 = arith.constant 0 : index
    %202 = vector.load %arg13[%c0_83, %c0_84, %c0_85] : memref<1x8x8xf32, #tpu.memory_space<vmem>>, vector<1x8x8xf32>
    %203 = vector.shape_cast %202 : vector<1x8x8xf32> to vector<8x8xf32>
    %204 = vector.shape_cast %201 : vector<8x8xf32> to vector<1x8x8xf32>
    tpu.vector_store %arg13[%c0_83, %c0_84, %c0_85], %204 {strides = array<i32>} : memref<1x8x8xf32, #tpu.memory_space<vmem>>, vector<1x8x8xf32>,
    return
  }
  func.func @transform_0(%arg0: i32) -> (i32, i32) {
    %c0_i32 = arith.constant 0 : i32
    %c0_i32_0 = arith.constant 0 : i32
    return %arg0, %c0_i32 : i32, i32
  }
  func.func @transform_1(%arg0: i32) -> (i32, i32) {
    %c0_i32 = arith.constant 0 : i32
    %c0_i32_0 = arith.constant 0 : i32
    return %arg0, %c0_i32 : i32, i32
  }
  func.func @transform_2(%arg0: i32) -> (i32, i32) {
    %c0_i32 = arith.constant 0 : i32
    %c0_i32_0 = arith.constant 0 : i32
    %c0_i32_1 = arith.constant 0 : i32
    return %c0_i32, %c0_i32_0 : i32, i32
  }
  func.func @transform_3(%arg0: i32) -> (i32, i32) {
    %c0_i32 = arith.constant 0 : i32
    %c0_i32_0 = arith.constant 0 : i32
    %c0_i32_1 = arith.constant 0 : i32
    return %c0_i32, %c0_i32_0 : i32, i32
  }
  func.func @transform_4(%arg0: i32) -> (i32, i32) {
    %c0_i32 = arith.constant 0 : i32
    %c0_i32_0 = arith.constant 0 : i32
    %c0_i32_1 = arith.constant 0 : i32
    return %c0_i32, %c0_i32_0 : i32, i32
  }
  func.func @transform_5(%arg0: i32) -> (i32, i32) {
    %c0_i32 = arith.constant 0 : i32
    %c0_i32_0 = arith.constant 0 : i32
    %c0_i32_1 = arith.constant 0 : i32
    return %c0_i32, %c0_i32_0 : i32, i32
  }
  func.func @transform_6(%arg0: i32) -> (i32, i32, i32) {
    %c0_i32 = arith.constant 0 : i32
    %c0_i32_0 = arith.constant 0 : i32
    %c0_i32_1 = arith.constant 0 : i32
    %c0_i32_2 = arith.constant 0 : i32
    return %c0_i32, %c0_i32_0, %c0_i32_1 : i32, i32, i32
  }
  func.func @transform_7(%arg0: i32) -> (i32, i32) {
    %c0_i32 = arith.constant 0 : i32
    %c0_i32_0 = arith.constant 0 : i32
    %c0_i32_1 = arith.constant 0 : i32
    return %c0_i32, %c0_i32_0 : i32, i32
  }
  func.func @transform_8(%arg0: i32) -> (i32, i32) {
    %c0_i32 = arith.constant 0 : i32
    %c0_i32_0 = arith.constant 0 : i32
    %c0_i32_1 = arith.constant 0 : i32
    return %c0_i32, %c0_i32_0 : i32, i32
  }
  func.func @transform_9(%arg0: i32) -> (i32, i32) {
    %c0_i32 = arith.constant 0 : i32
    %c0_i32_0 = arith.constant 0 : i32
    %c0_i32_1 = arith.constant 0 : i32
    return %c0_i32, %c0_i32_0 : i32, i32
  }
  func.func @transform_10(%arg0: i32) -> (i32, i32) {
    %c0_i32 = arith.constant 0 : i32
    %c0_i32_0 = arith.constant 0 : i32
    %c0_i32_1 = arith.constant 0 : i32
    return %c0_i32, %c0_i32_0 : i32, i32
  }
  func.func @transform_11(%arg0: i32) -> (i32, i32, i32) {
    %c0_i32 = arith.constant 0 : i32
    %c0_i32_0 = arith.constant 0 : i32
    %c0_i32_1 = arith.constant 0 : i32
    return %arg0, %c0_i32, %c0_i32_0 : i32, i32, i32
  }
  func.func @transform_12(%arg0: i32) -> (i32, i32, i32) {
    %c0_i32 = arith.constant 0 : i32
    %c0_i32_0 = arith.constant 0 : i32
    %c0_i32_1 = arith.constant 0 : i32
    return %arg0, %c0_i32, %c0_i32_0 : i32, i32, i32
  }
}

</mosaic_0001>

<bundles_post_ra>
// kernel: tpu_custom_call.1
= control target key start
LH: loop header
LB: loop body
LE: loop exit
PB: predicated region body
PF: predicated region fallthrough
CT: control target
= control target key end

     0   :  { %s3210_s0 = inlined_call_operand.hbm [shape: f32[16,32], index: 0, kind: input, shape index: {}]   ;;  %s3211_s1 = inlined_call_operand.hbm [shape: f32[16,32], index: 1, kind: input, shape index: {}]   ;;  %s3212_s2 = inlined_call_operand.hbm [shape: f32[8,32], index: 2, kind: input, shape index: {}]   ;;  %s3213_s3 = inlined_call_operand.hbm [shape: f32[8,8], index: 3, kind: input, shape index: {}]   ;;  %s3214_s4 = inlined_call_operand.hbm [shape: bf16[32,32], index: 4, kind: input, shape index: {}]   ;;  %s3215_s5 = inlined_call_operand.vmem [shape: bf16[32,64], index: 5, kind: input, shape index: {}]   ;;  %s3216_s6 = inlined_call_operand.hbm [shape: bf16[4,8,32], index: 6, kind: input, shape index: {}]   ;;  %s3217_s7 = inlined_call_operand.hbm [shape: bf16[32,32], index: 7, kind: input, shape index: {}]   ;;  %s3218_s8 = inlined_call_operand.hbm [shape: bf16[32,32], index: 8, kind: input, shape index: {}]   ;;  %s3219_s9 = inlined_call_operand.vmem [shape: bf16[1,32], index: 9, kind: input, shape index: {}]   ;;  %s3220_s10 = inlined_call_operand.vmem [shape: f32[11,32], index: 10, kind: input, shape index: {}]   ;;  %s3221_s11 = inlined_call_operand.hbm [shape: f32[2,1,8], index: 11, kind: output, shape index: {0}]   ;;  %s3222_s12 = inlined_call_operand.hbm [shape: f32[2,8,8], index: 12, kind: output, shape index: {1}]  }
   0x1   :  { %3230 = sst [smem:[#allocation27_spill]] %s3212_s2 }
   0x2   :  { %3231 = sst [smem:[#allocation28_spill]] %s3213_s3 }
   0x3   :  { %3232 = sst [smem:[#allocation29_spill]] %s3214_s4 }
   0x4   :  { %3233 = sst [smem:[#allocation30_spill]] %s3216_s6 }
   0x5   :  { %3234 = sst [smem:[#allocation31_spill]] %s3217_s7 }
   0x6   :  { %3235 = sst [smem:[#allocation32_spill]] %s3219_s9 }
   0x7   :  { %3236 = sst [smem:[#allocation33_spill]] %s3220_s10 }
   0x8   :  { %3237 = sst [smem:[#allocation34_spill]] %s3221_s11 }
   0x9   :  { %3238 = sst [smem:[#allocation35_spill]] %s3222_s12 }
   0xa   :  { %18 = vsyncpa [#allocation3], 0 }
   0xb   :  { %20 = vsyncpa [#allocation3 + $0x1], 0 }
   0xc   :  { %21 = vsyncpa [#allocation6], 0 }
   0xd   :  { %23 = vsyncpa [#allocation6 + $0x1], 0 }
   0xe   :  { %24 = vsyncpa [#allocation9], 0 }
   0xf   :  { %25 = vsyncpa [#allocation12], 0 }
  0x10   :  { %26 = vsyncpa [#allocation15], 0 }
  0x11   :  { %27 = vsyncpa [#allocation4], 0 }
  0x12   :  { %29 = vsyncpa [#allocation4 + $0x1], 0 }
  0x13   :  { %30 = vsyncpa [#allocation18], 0 }
  0x14   :  { %32 = vsyncpa [#allocation18 + $0x1], 0  ;;  %s2627_s21 = smov 0   ;;  %s2629_s22 = smov 0  }
  0x15   :  { %s2631_s23 = smov 0   ;;  %s2633_s24 = smov 0  }
  0x16 LB: > { %s2539_s25 = smov [#allocation7]   ;;  %s2648_s27 = sadd.s32 4294967295, %s2537_s24   ;;  %s2537_s24 = sphi %s2633_s24, %s3273_s24   ;;  %s2533_s23 = sphi %s2631_s23, %s3272_s23   ;;  %s2529_s22 = sphi %s2629_s22, %s3271_s22   ;;  %s2525_s21 = sphi %s2627_s21, %s3270_s21  }
  0x17   : > { %s349_s26 = sshll.u32 %s2539_s25, 4  ;;  %p1817_p0 = scmp.ge.s32.totalorder %s2537_s24, 1  ;;  %s350_s26 = int_to_ptr.vmem [resolvable:$true] %s349_s26 }
  0x18   : > { %p3223_p1 = scmp.eq.s32.totalorder %s2648_s27, 0  ;;  %p336_p2 = scmp.lt.s32.totalorder %s2537_s24, 3 }
  0x19   : > { %s2540_s29 = smov [#allocation8]   ;;  %s2541_s14 = smov [#allocation11]  }
  0x1a   : > { %p2653_p3 = pnand %p1817_p0, %p336_p2  ;;  %s360_s30 = sshll.u32 %s2540_s29, 4  ;;  %s2660_s30 = int_to_ptr.vmem [resolvable:$true] %s360_s30 }
  0x1b   : > { %s386_s15 = sshll.u32 %s2541_s14, 4  ;;  %s3241_s2 = sld [smem:[#allocation27_spill]]  ;;  %s2668_s15 = int_to_ptr.vmem [resolvable:$true] %s386_s15 }
  0x1c   : > { %s3239_s28 = scalar_select %p2653_p3, 1, 0 }
  0x1d   : > { %p2060_p5 = pneg %p2653_p3 }
  0x1f   : > { %p2664_p6 = pnand %p2060_p5, %p3223_p1 }
  0x21   : > { %s2191_s18 = scalar_lea.hbm %s3241_s2, 128  ;;  %p2678_p8 = pneg %p2664_p6 }
  0x22   : > { %p2192_p7 = scmp.ne.s32.totalorder %s3241_s2, %s2191_s18  ;;  %p2198_p11 = scmp.lt.u32.totalorder %s2191_s18, %s3241_s2 }
  0x24   : > { %p2194_p9 = pnand %p2678_p8, %p2192_p7 }
  0x26   : > { %p2195_p10 = pneg %p2194_p9 }
  0x28   : > { %p2200_p12 = pnand %p2198_p11, %p2195_p10 }
  0x2a   : > { %2203 = shalt.err (!%p2200_p12)
}
  0x2b   : > { %s2204_s16 = scalar_lea.vmem %s350_s26, 128  ;;  %p2212_p5 = scmp.lt.s32.totalorder %s350_s26, %s350_s26 }
  0x2c   : > { %p2205_p13 = scmp.ne.s32.totalorder %s350_s26, %s2204_s16  ;;  %p2213_p4 = scmp.lt.s32.totalorder %s2204_s16, %s2204_s16 }
  0x2e   : > { %p2207_p0 = pnand %p2205_p13, %p2678_p8  ;;  %p2214_p1 = por %p2213_p4, %p2212_p5 }
  0x30   : > { %p2208_p2 = pneg %p2207_p0 }
  0x32   : > { %p2215_p3 = pnand %p2214_p1, %p2208_p2 }
  0x34   : > { %2218 = shalt.err (!%p2215_p3)
}
  0x35   : > { %2063 = dma.hbm_to_vmem [thread:$0]  (!%p2664_p6), %s3241_s2, 128, %s350_s26, [#allocation6]  }
  0x36   : > { %s3243_s3 = sld [smem:[#allocation28_spill]] }
  0x3c   : > { %s2219_s29 = scalar_lea.hbm %s3243_s3, 128 }
  0x3d   : > { %p2220_p7 = scmp.ne.s32.totalorder %s3243_s3, %s2219_s29  ;;  %p2226_p1 = scmp.lt.u32.totalorder %s2219_s29, %s3243_s3 }
  0x3f   : > { %p2222_p9 = pnand %p2220_p7, %p2678_p8 }
  0x41   : > { %p2223_p4 = pneg %p2222_p9 }
  0x43   : > { %p2228_p3 = pnand %p2226_p1, %p2223_p4 }
  0x45   : > { %2231 = shalt.err (!%p2228_p3)
}
  0x46   : > { %s2232_s26 = scalar_lea.vmem %s2660_s30, 128  ;;  %p2240_p13 = scmp.lt.s32.totalorder %s2660_s30, %s2660_s30 }
  0x47   : > { %p2233_p10 = scmp.ne.s32.totalorder %s2660_s30, %s2232_s26  ;;  %p2241_p0 = scmp.lt.s32.totalorder %s2232_s26, %s2232_s26 }
  0x49   : > { %p2235_p11 = pnand %p2233_p10, %p2678_p8  ;;  %p2242_p2 = por %p2241_p0, %p2240_p13 }
  0x4b   : > { %p2236_p12 = pneg %p2235_p11 }
  0x4d   : > { %p2243_p5 = pnand %p2242_p2, %p2236_p12 }
  0x4f   : > { %2246 = shalt.err (!%p2243_p5)
}
  0x50   : > { %2066 = dma.hbm_to_vmem [thread:$0]  (!%p2664_p6), %s3243_s3, 128, %s2660_s30, [#allocation9]  }
  0x51   : > { %s3244_s6 = sld [smem:[#allocation30_spill]] }
  0x57   : > { %s2247_s18 = scalar_lea.hbm %s3244_s6, 256 }
  0x58   : > { %p2248_p7 = scmp.ne.s32.totalorder %s3244_s6, %s2247_s18  ;;  %p2254_p1 = scmp.lt.u32.totalorder %s2247_s18, %s3244_s6 }
  0x5a   : > { %p2250_p9 = pnand %p2248_p7, %p2678_p8 }
  0x5c   : > { %p2251_p4 = pneg %p2250_p9 }
  0x5e   : > { %p2256_p3 = pnand %p2254_p1, %p2251_p4 }
  0x60   : > { %2259 = shalt.err (!%p2256_p3)
}
  0x61   : > { %s2260_s30 = scalar_lea.vmem %s2668_s15, 256  ;;  %p2268_p13 = scmp.lt.s32.totalorder %s2668_s15, %s2668_s15 }
  0x62   : > { %p2261_p10 = scmp.ne.s32.totalorder %s2668_s15, %s2260_s30  ;;  %p2269_p0 = scmp.lt.s32.totalorder %s2260_s30, %s2260_s30 }
  0x64   : > { %p2263_p11 = pnand %p2261_p10, %p2678_p8  ;;  %p2270_p2 = por %p2269_p0, %p2268_p13 }
  0x66   : > { %p2264_p12 = pneg %p2263_p11 }
  0x68   : > { %p2271_p5 = pnand %p2270_p2, %p2264_p12 }
  0x6a   : > { %2274 = shalt.err (!%p2271_p5)
}
  0x6b   : > { %s2542_s26 = smov 64   ;;  %s2543_s11 = smov 4  }
  0x6c   : > { %2072 = dma.hbm_to_vmem [thread:$0]  (!%p2664_p6), %s3244_s6, 256, %s2668_s15, [#allocation12], %s2542_s26, %s2542_s26, %s2543_s11  }
  0x6d   : > { %s2544_s19 = smov [#allocation10]   ;;  %s2545_s20 = smov [#allocation13]  }
  0x6e   : > { %s370_s18 = sshll.u32 %s2544_s19, 4  ;;  %s399_s29 = sshll.u32 %s2545_s20, 4  ;;  %s371_s18 = int_to_ptr.vmem [resolvable:$true] %s370_s18  ;;  %s400_s29 = int_to_ptr.vmem [resolvable:$true] %s399_s29 }
  0x6f   : > { %s3245_s4 = sld [smem:[#allocation29_spill]] }
  0x75   : > { %s2275_s30 = scalar_lea.hbm %s3245_s4, 256 }
  0x76   : > { %p2276_p7 = scmp.ne.s32.totalorder %s3245_s4, %s2275_s30  ;;  %p2282_p1 = scmp.lt.u32.totalorder %s2275_s30, %s3245_s4 }
  0x78   : > { %p2278_p9 = pnand %p2276_p7, %p2678_p8 }
  0x7a   : > { %p2279_p4 = pneg %p2278_p9 }
  0x7c   : > { %p2284_p3 = pnand %p2282_p1, %p2279_p4 }
  0x7e   : > { %2287 = shalt.err (!%p2284_p3)
}
  0x7f   : > { %s2288_s15 = scalar_lea.vmem %s371_s18, 256  ;;  %p2296_p13 = scmp.lt.s32.totalorder %s371_s18, %s371_s18 }
  0x80   : > { %p2289_p10 = scmp.ne.s32.totalorder %s371_s18, %s2288_s15  ;;  %p2297_p0 = scmp.lt.s32.totalorder %s2288_s15, %s2288_s15 }
  0x82   : > { %p2291_p11 = pnand %p2289_p10, %p2678_p8  ;;  %p2298_p2 = por %p2297_p0, %p2296_p13 }
  0x84   : > { %p2292_p12 = pneg %p2291_p11 }
  0x86   : > { %p2299_p5 = pnand %p2298_p2, %p2292_p12 }
  0x88   : > { %2302 = shalt.err (!%p2299_p5)
}
  0x89   : > { %2069 = dma.hbm_to_vmem [thread:$0]  (!%p2664_p6), %s3245_s4, 256, %s371_s18, [#allocation9], %s2542_s26, %s2542_s26, %s2543_s11  }
  0x8a   : > { %s3246_s7 = sld [smem:[#allocation31_spill]] }
  0x90   : > { %s2303_s12 = scalar_lea.hbm %s3246_s7, 256 }
  0x91   : > { %p2304_p7 = scmp.ne.s32.totalorder %s3246_s7, %s2303_s12  ;;  %p2310_p1 = scmp.lt.u32.totalorder %s2303_s12, %s3246_s7 }
  0x93   : > { %p2306_p9 = pnand %p2304_p7, %p2678_p8 }
  0x95   : > { %p2307_p4 = pneg %p2306_p9 }
  0x97   : > { %p2312_p3 = pnand %p2310_p1, %p2307_p4 }
  0x99   : > { %2315 = shalt.err (!%p2312_p3)
}
  0x9a   : > { %s2316_s16 = scalar_lea.vmem %s400_s29, 256  ;;  %p2324_p13 = scmp.lt.s32.totalorder %s400_s29, %s400_s29 }
  0x9b   : > { %p2317_p10 = scmp.ne.s32.totalorder %s400_s29, %s2316_s16  ;;  %p2325_p0 = scmp.lt.s32.totalorder %s2316_s16, %s2316_s16 }
  0x9d   : > { %p2319_p11 = pnand %p2317_p10, %p2678_p8  ;;  %p2326_p2 = por %p2325_p0, %p2324_p13 }
  0x9f   : > { %p2320_p12 = pneg %p2319_p11 }
  0xa1   : > { %p2327_p5 = pnand %p2326_p2, %p2320_p12 }
  0xa3   : > { %2330 = shalt.err (!%p2327_p5)
}
  0xa4   : > { %2075 = dma.hbm_to_vmem [thread:$0]  (!%p2664_p6), %s3246_s7, 256, %s400_s29, [#allocation12], %s2542_s26, %s2542_s26, %s2543_s11  }
  0xa5   : > { %s2546_s15 = smov [#allocation14]   ;;  %s2331_s10 = scalar_lea.hbm %s3218_s8, 256 }
  0xa6   : > { %s412_s2 = sshll.u32 %s2546_s15, 4  ;;  %p2332_p7 = scmp.ne.s32.totalorder %s3218_s8, %s2331_s10  ;;  %s413_s2 = int_to_ptr.vmem [resolvable:$true] %s412_s2 }
  0xa7   : > { %p2338_p1 = scmp.lt.u32.totalorder %s2331_s10, %s3218_s8 }
  0xa8   : > { %p2334_p9 = pnand %p2332_p7, %p2678_p8 }
  0xaa   : > { %p2335_p4 = pneg %p2334_p9 }
  0xac   : > { %p2340_p3 = pnand %p2338_p1, %p2335_p4 }
  0xae   : > { %2343 = shalt.err (!%p2340_p3)
}
  0xaf   : > { %s2344_s29 = scalar_lea.vmem %s413_s2, 256  ;;  %p2352_p13 = scmp.lt.s32.totalorder %s413_s2, %s413_s2 }
  0xb0   : > { %p2345_p10 = scmp.ne.s32.totalorder %s413_s2, %s2344_s29  ;;  %p2353_p0 = scmp.lt.s32.totalorder %s2344_s29, %s2344_s29 }
  0xb2   : > { %p2347_p11 = pnand %p2345_p10, %p2678_p8  ;;  %p2354_p2 = por %p2353_p0, %p2352_p13 }
  0xb4   : > { %p2348_p12 = pneg %p2347_p11 }
  0xb6   : > { %p2355_p5 = pnand %p2354_p2, %p2348_p12 }
  0xb8   : > { %2358 = shalt.err (!%p2355_p5)
}
  0xb9   : > { %2078 = dma.hbm_to_vmem [thread:$0]  (!%p2664_p6), %s3218_s8, 256, %s413_s2, [#allocation15], %s2542_s26, %s2542_s26, %s2543_s11  }
  0xba   : > { %s1816_s13 = sadd.s32 4294967294, %s2537_s24   ;;  %s2808_s25 = sadd.s32 1, %s2537_s24  }
  0xbb   : > { %s42_s18 = ssub.s32 %s2537_s24, %s2808_s25  ;;  %s45_s30 = sadd.s32 1, %s2533_s23 }
  0xbc   : > { %p43_p8 = scmp.eq.s32.totalorder %s42_s18, 0  ;;  %p52_p7 = scmp.ne.s32.totalorder %s2533_s23, %s2529_s22 }
  0xbd   : > { %p53_p9 = scmp.eq.s32.totalorder %s2537_s24, 0  ;;  %p58_p4 = scmp.ne.s32.totalorder %s2529_s22, %s2525_s21 }
  0xbe   : > { %s2819_s15 = scalar_select %p43_p8, %s2533_s23, %s45_s30  }
  0xbf   : > { %p2821_p1 = por %p53_p9, %p52_p7  ;;  %p3248_p3 = scmp.eq.s32.totalorder %s2648_s27, 0 }
  0xc0   : > { %p297_p10 = scmp.eq.s32.totalorder %s2648_s27, 1  ;;  %p303_p11 = scmp.eq.s32.totalorder %s1816_s13, 1 }
  0xc1   : > { %p2827_p6 = por %p3248_p3, %p58_p4  ;;  %p2099_p12 = scmp.lt.s32.totalorder %s2537_s24, 2 }
  0xc2   : > { %s432_s11 = sand.u32 1, %s2533_s23   ;;  %p2834_p13 = por %p297_p10, %p52_p7 }
  0xc3   : > { %s3249_s26 = scalar_select %p2827_p6, 1, 0 }
  0xc4   : > { %s3250_s2 = scalar_select %p2834_p13, 1, 0 }
  0xc5   : > { %p2838_p0 = por %p303_p11, %p58_p4  ;;  %s2842_s10 = sshll.u32 %s432_s11, 3 }
  0xc6   : > { %s1826_s12 = sshll.u32 %s2537_s24, 7  ;;  %s436_s29 = scalar_lea.vmem [#allocation2], %s2842_s10 }
  0xc7   : > { %s3251_s9 = scalar_select %p2838_p0, 1, 0 }
  0xc8   : > { %s2848_s20 = scalar_lea.hbm %s3210_s0, %s1826_s12  ;;  %s443_s14 = sshll.u32 %s436_s29, 4  ;;  %s2851_s14 = int_to_ptr.vmem [resolvable:$true] %s443_s14 }
  0xc9   : > { %p2855_p2 = pnand %p2099_p12, %p2821_p1  ;;  %s2862_s30 = scalar_lea.hbm %s3211_s1, %s1826_s12 }
  0xca   : > { %s450_s17 = sand.u32 1, %s2537_s24   ;;  %s433_s19 = scalar_lea.sflag [#allocation3], %s432_s11 }
  0xcb   : > { %s2359_s4 = scalar_lea.hbm %s2848_s20, 128  ;;  %p2361_p8 = pneg %p2855_p2 }
  0xcc   : > { %p2360_p5 = scmp.ne.s32.totalorder %s2848_s20, %s2359_s4  ;;  %s2364_s6 = scalar_lea.hbm %s3210_s0, 256 }
  0xcd   : > { %p2365_p4 = scmp.lt.u32.totalorder %s2848_s20, %s3210_s0  ;;  %p2366_p1 = scmp.lt.u32.totalorder %s2364_s6, %s2359_s4 }
  0xce   : > { %p2362_p7 = pnand %p2361_p8, %p2360_p5  ;;  %p2368_p10 = scmp.lt.u32.totalorder %s2359_s4, %s2848_s20 }
  0xcf   : > { %p2367_p3 = por %p2366_p1, %p2365_p4 }
  0xd0   : > { %p2363_p9 = pneg %p2362_p7 }
  0xd1   : > { %p2369_p11 = por %p2368_p10, %p2367_p3 }
  0xd3   : > { %p2370_p12 = pnand %p2369_p11, %p2363_p9 }
  0xd5   : > { %2373 = shalt.err (!%p2370_p12)
}
  0xd6   : > { %s2374_s11 = scalar_lea.vmem %s2851_s14, 128  ;;  %s2547_s12 = smov [#allocation2]  }
  0xd7   : > { %p2375_p5 = scmp.ne.s32.totalorder %s2851_s14, %s2374_s11  ;;  %s2379_s18 = sshll.u32 %s2547_s12, 4  ;;  %s2380_s18 = int_to_ptr.vmem [resolvable:$false] %s2379_s18 }
  0xd8   : > { %s2381_s7 = scalar_lea.vmem %s2380_s18, 256  ;;  %p2382_p13 = scmp.lt.s32.totalorder %s2851_s14, %s2380_s18 }
  0xd9   : > { %p2377_p7 = pnand %p2375_p5, %p2361_p8  ;;  %p2383_p4 = scmp.lt.s32.totalorder %s2381_s7, %s2374_s11 }
  0xdb   : > { %p2378_p0 = pneg %p2377_p7  ;;  %p2384_p1 = por %p2383_p4, %p2382_p13 }
  0xdd   : > { %p2385_p3 = pnand %p2384_p1, %p2378_p0 }
  0xdf   : > { %2388 = shalt.err (!%p2385_p3)
}
  0xe0   : > { %2082 = dma.hbm_to_vmem [thread:$0]  (!%p2855_p2), %s2848_s20, 128, %s2851_s14, %s433_s19  }
  0xe1   : > { %s454_s4 = scalar_lea.vmem [#allocation5], %s2842_s10  ;;  %s451_s3 = scalar_lea.sflag [#allocation6], %s450_s17 }
  0xe2   : > { %s461_s6 = sshll.u32 %s454_s4, 4  ;;  %s2389_s29 = scalar_lea.hbm %s2862_s30, 128  ;;  %s462_s6 = int_to_ptr.vmem [resolvable:$true] %s461_s6 }
  0xe3   : > { %p2390_p13 = scmp.ne.s32.totalorder %s2862_s30, %s2389_s29  ;;  %s2394_s12 = scalar_lea.hbm %s3211_s1, 256 }
  0xe4   : > { %p2395_p10 = scmp.lt.u32.totalorder %s2862_s30, %s3211_s1  ;;  %p2396_p11 = scmp.lt.u32.totalorder %s2394_s12, %s2389_s29 }
  0xe5   : > { %p2392_p0 = pnand %p2390_p13, %p2361_p8  ;;  %p2398_p5 = scmp.lt.u32.totalorder %s2389_s29, %s2862_s30 }
  0xe6   : > { %p2397_p12 = por %p2396_p11, %p2395_p10 }
  0xe7   : > { %p2393_p9 = pneg %p2392_p0 }
  0xe8   : > { %p2399_p7 = por %p2398_p5, %p2397_p12 }
  0xea   : > { %p2400_p4 = pnand %p2399_p7, %p2393_p9 }
  0xec   : > { %2403 = shalt.err (!%p2400_p4)
}
  0xed   : > { %s2404_s10 = scalar_lea.vmem %s462_s6, 128  ;;  %s2548_s20 = smov [#allocation5]  }
  0xee   : > { %p2405_p1 = scmp.ne.s32.totalorder %s462_s6, %s2404_s10  ;;  %s2409_s14 = sshll.u32 %s2548_s20, 4  ;;  %s2410_s14 = int_to_ptr.vmem [resolvable:$false] %s2409_s14 }
  0xef   : > { %s2411_s17 = scalar_lea.vmem %s2410_s14, 256  ;;  %p2412_p0 = scmp.lt.s32.totalorder %s462_s6, %s2410_s14 }
  0xf0   : > { %p2407_p3 = pnand %p2405_p1, %p2361_p8  ;;  %p2413_p6 = scmp.lt.s32.totalorder %s2411_s17, %s2404_s10 }
  0xf2   : > { %p2408_p13 = pneg %p2407_p3  ;;  %p2414_p10 = por %p2413_p6, %p2412_p0 }
  0xf4   : > { %p2415_p11 = pnand %p2414_p10, %p2408_p13 }
  0xf6   : > { %2418 = shalt.err (!%p2415_p11)
}
  0xf7   : > { %2085 = dma.hbm_to_vmem [thread:$0]  (!%p2855_p2), %s2862_s30, 128, %s462_s6, %s451_s3  }
  0xf8   : > { %p3253_p9 = scmp.ne.s32.totalorder %s3239_s28, 0 }
  0xf9   : > { %s2915_s19 = sand.u32 (!%p3253_p9), 1, %s2529_s22   ;;  %p3254_p6 = scmp.ne.s32.totalorder (!%p3253_p9), %s3249_s26, 0 }
  0xfa   : > { %470 = sbr.rel (%p3253_p9) target bundleno = 4202 (0x106a), region = 64  ;;  %s2918_s4 = sshll.u32 (!%p3253_p9), %s2915_s19, 3 }
  0xfb   : > { %s473_s29 = scalar_lea.sflag (!%p3253_p9), [#allocation3], %s2915_s19  ;;  %s476_s13 = scalar_lea.vmem (!%p3253_p9), [#allocation2], %s2918_s4 }
 0x101   : > { %2492 = dma.done.wait (%p3254_p6), %s473_s29, 128  }
 0x102   : > { %2494 = vsyncadd (%p3254_p6), %s473_s29, 4294967168  ;;  %s481_s28 = sand.u32 1, %s2648_s27   ;;  %s485_s30 = scalar_lea.vmem [#allocation5], %s2918_s4 }
 0x103   : > { %s482_s16 = scalar_lea.sflag [#allocation6], %s481_s28 }
 0x104   : > { %2496 = dma.done.wait (%p3254_p6), %s482_s16, 128  }
 0x105   : > { %2498 = vsyncadd (%p3254_p6), %s482_s16, 4294967168  ;;  %p3255_p2 = scmp.eq.s32.totalorder %s2648_s27, 0 }
 0x107   : > { %2500 = dma.done.wait (%p3255_p2), [#allocation6], 128   ;;  %p3256_p8 = pmov %p3255_p2 }
 0x108   : > { %p3257_p12 = pmov %p3255_p2 }
 0x109   : > { %2502 = vsyncadd (%p3256_p8), [#allocation6], 4294967168 }
 0x10a   : > { %2504 = dma.done.wait (%p3257_p12), [#allocation9], 384   ;;  %p3258_p5 = pmov %p3255_p2 }
 0x10b   : > { %p3259_p7 = pmov %p3255_p2 }
 0x10c   : > { %2506 = vsyncadd (%p3258_p5), [#allocation9], 4294966912 }
 0x10d   : > { %2508 = dma.done.wait (%p3259_p7), [#allocation12], 512   ;;  %p3260_p4 = pmov %p3255_p2 }
 0x10e   : > { %p3261_p1 = pmov %p3255_p2 }
 0x10f   : > { %2510 = vsyncadd (%p3260_p4), [#allocation12], 4294966784 }
 0x110   : > { %2512 = dma.done.wait (%p3261_p1), [#allocation15], 256   ;;  %p3262_p3 = pmov %p3261_p1 }
 0x111   : > { %v2549_v0 = vmov 0.0   ;;  %vm2550_vm0 = vmmov 0   ;;  %v2159_v1 = vld [vmem:[%s3215_s5] sm:$0xff]   ;;  %v2160_v2 = vld [vmem:[#allocation10] sm:$0xff]   ;;  %v2161_v3 = vld [vmem:[%s3215_s5 + $0x8] sm:$0xff]   ;;  %vm598_vm1 = vcmask 261120  }
 0x112   : > { %2514 = vsyncadd (%p3262_p3), [#allocation15], 4294967040  ;;  %1926 = vmatprep.subr.bf16.mxu1 %v2549_v0  ;;  %1918 = vmatprep.subr.bf16.mxu0 %v2549_v0  ;;  %v572_v4 = vld [vmem:[%s485_s30] sm:$0xff]  ;;  %v573_v5 = vld [vmem:[#allocation7] sm:$0xff]  ;;  %s3263_s7 = sld [smem:[#allocation33_spill]]  ;;  %vm718_vm2 = vcmask 64512  }
 0x113   : > { %1930 = vmatprep.mubr.msk.bf16.mxu1 %vm2550_vm0, %v2549_v0  ;;  %1922 = vmatprep.mubr.msk.bf16.mxu0 %vm2550_vm0, %v2549_v0  ;;  %v2962_v6 = vadd.f32 %v573_v5, %v572_v4  ;;  %v2162_v7 = vld [vmem:[#allocation10 + $0x8] sm:$0xff]   ;;  %v2966_v8 = vld [vmem:[%s476_s13] sm:$0xff]  ;;  %s2551_s14 = smov 120   ;;  %s2552_s13 = smov 32   ;;  %vm784_vm3 = vcmask 1043456  }
 0x114   : > { %1927 = vmatpush3.bf16.msra.mxu1 %v2159_v1  ;;  %1919 = vmatpush3.bf16.msra.mxu0 %v2160_v2  ;;  %v576_v10 = vpack.c.bf16 %v2966_v8, %v2966_v8  ;;  %v3007_v30 = vld [vmem:[#allocation8] sm:$0xff]  ;;  %s2553_s28 = smov 96   ;;  %s2554_s16 = smov 88   ;;  %v945_v1 = vld [vmem:[#allocation11 + $0x4] sm:$0xf] }
 0x115   : > { %1928 = vmatprep.subr.bf16.mxu1 %v2549_v0  ;;  %1920 = vmatprep.subr.bf16.mxu0 %v2549_v0  ;;  %v577_v9 = vpack.c.bf16 %v2962_v6, %v2962_v6  ;;  %s2555_s30 = smov 112   ;;  %s2556_s26 = smov 80   ;;  %v950_v2 = vsel %vm784_vm3, %v945_v1, 0  ;;  %v829_v5 = vld [vmem:[#allocation11] sm:$0xf] }
 0x116   : > { %s2557_s6 = smov 104   ;;  %s2558_s3 = smov 72  }
 0x117   : > { %s558_s11 = scalar_lea.vmem [#allocation17], %s2918_s4  ;;  %s1877_s17 = sshll.u32 %s2648_s27, 7 }
 0x118   : > { %1929 = vmatpush3.bf16.msra.mxu1 %v2161_v3  ;;  %1921 = vmatpush3.bf16.msra.mxu0 %v2162_v7  ;;  %v1846_v11 = vld [vmem:[%s3263_s7 + $0x1] ss:$0 sm:$0xff]  ;;  %v1839_v12 = vld [vmem:[%s3263_s7] ss:$0 sm:$0xff]  ;;  %v1847_v26 = vld [vmem:[%s3263_s7 + $0x2] ss:$0 sm:$0xff] }
 0x119   : > { %1940 = vmatprep.subr.bf16.mxu1 %v2549_v0  ;;  %1934 = vmatprep.subr.bf16.mxu0 %v2549_v0  ;;  %s1638_s29 = sshll.u32 %s558_s11, 4  ;;  %p3266_p0 = scmp.ne.s32.totalorder %s3250_s2, 0  ;;  %s1639_s29 = int_to_ptr.vmem [resolvable:$true] %s1638_s29 }
 0x11b   : > { %1931 = vmatmul.mubr.msk.bf16.vlgmr.msra.gmra.mrb[0].mxu1 %vm598_vm1, %v577_v9  ;;  %1923 = vmatmul.mubr.msk.bf16.vlgmr.msra.gmra.mrb[0].mxu0 %vm598_vm1, %v576_v10  ;;  %v996_v10 = vsel %vm784_vm3, %v829_v5, 0 }
 0x11c   : > { %1942 = vmatprep.mubr.msk.bf16.mxu1 %vm2550_vm0, %v2549_v0  ;;  %1936 = vmatprep.mubr.msk.bf16.mxu0 %vm2550_vm0, %v2549_v0 }
 0x1ee   : > { %v695_v13 = vpop.f32.mrb[0].mxu1  ;;  %v636_v16 = vpop.f32.mrb[0].mxu0 }
 0x1ef   : > { %v705_v14 = vadd.f32 %v1846_v11, %v695_v13  ;;  %v1932_v15 = vpop.f32.mrb[1].mxu1  ;;  %v637_v18 = vadd.f32 %v1839_v12, %v636_v16  ;;  %v1924_v19 = vpop.f32.mrb[1].mxu0 }
 0x1f0   : > { %v698_v17 = vpop.f32.mrb[2].mxu1  ;;  %v639_v22 = vpop.f32.mrb[2].mxu0 }
 0x1f1   : > { %v2986_v20 = vpack.c.bf16 %v705_v14, %v705_v14  ;;  %v1933_v21 = vpop.f32.mrb[3].mxu1  ;;  %v1925_v23 = vpop.f32.mrb[3].mxu0  ;;  %v2988_v24 = vpack.c.bf16 %v637_v18, %v637_v18 }
 0x1f3   : > { %834 = vrot.lane.b32.xlu0 %v2986_v20, %s2551_s14  ;;  %v723_v25 = vsel %vm718_vm2, %v2986_v20, 0 }
 0x1f4   : > { %1935 = vmatpush3.bf16.xpose.msra.mxu0 %v723_v25 }
 0x1f5   : > { %1946 = vmatprep.subr.bf16.mxu0 %v2549_v0 }
 0x1f7   : > { %831 = vrot.lane.b32.xlu0 %v2988_v24, %s2551_s14  ;;  %s3264_s14 = sld [smem:[#allocation32_spill]] }
 0x1fb   : > { %711 = vrot.lane.b32.xlu0 %v1847_v26, %s2552_s13  ;;  %1937 = vmatmul.mubr.msk.bf16.vlgmr.msra.gmra.mrb[4].mxu0 %vm718_vm2, %v2988_v24 }
 0x1fc   : > { %1948 = vmatprep.mubr.msk.bf16.mxu0 %vm2550_vm0, %v2549_v0 }
 0x265   : > { %v835_v27 = vpop.permute.xlu0 %834 }
 0x266   : > { %v840_v28 = vsel %vm718_vm2, %v835_v27, 0 }
 0x267   : > { %1947 = vmatpush3.bf16.xpose.msra.mxu0 %v840_v28 }
 0x268   : > { %1958 = vmatprep.subr.bf16.mxu0 %v2549_v0 }
 0x269   : > { %v832_v29 = vpop.permute.xlu0 %831 }
 0x26d   : > { %v712_v48 = vpop.permute.xlu0 %711 }
 0x26e   : > { %1949 = vmatmul.mubr.msk.bf16.vlgmr.msra.gmra.mrb[8].mxu0 %vm718_vm2, %v832_v29  ;;  %v714_v49 = vadd.f32 %v712_v48, %v695_v13 }
 0x26f   : > { %1960 = vmatprep.mubr.msk.bf16.mxu0 %vm2550_vm0, %v2549_v0  ;;  %1959 = vmatpush3.bf16.msra.mxu0 %v950_v2 }
 0x270   : > { %v3014_v50 = vpack.c.bf16 %v714_v49, %v714_v49  ;;  %1970 = vmatprep.subr.bf16.mxu0 %v2549_v0 }
 0x2ce   : > { %v759_v31 = vpop.f32.mrb[4].mxu0 }
 0x2cf   : > { %v760_v32 = vadd.f32 %v759_v31, %v3007_v30  ;;  %v1938_v33 = vpop.f32.mrb[5].mxu0 }
 0x2d0   : > { %v762_v34 = vpop.f32.mrb[6].mxu0 }
 0x2d1   : > { %v1939_v35 = vpop.f32.mrb[7].mxu0  ;;  %v765_v36 = vsel %vm718_vm2, %v760_v32, -inf }
 0x2d2   : > { %766 = vmax.xlane.f32.xlu1 %v765_v36 }
 0x341   : > { %v876_v37 = vpop.f32.mrb[8].mxu0 }
 0x342   : > { %v877_v38 = vadd.f32 %v876_v37, %v3007_v30  ;;  %v1950_v39 = vpop.f32.mrb[9].mxu0 }
 0x343   : > { %v879_v40 = vpop.f32.mrb[10].mxu0 }
 0x344   : > { %v1951_v41 = vpop.f32.mrb[11].mxu0  ;;  %v882_v42 = vsel %vm718_vm2, %v877_v38, -inf }
 0x345   : > { %883 = vmax.xlane.f32.xlu1 %v882_v42 }
 0x35f   : > { %v767_v43 = vpop.xlane.xlu1 %766 }
 0x360   : > { %v768_v44 = vsub.f32 %v760_v32, %v767_v43 }
 0x362   : > { %v769_v45 = vmul.f32 1.442695, %v768_v44 }
 0x364   : > { %2167 = vpow2.f32 %v769_v45 }
 0x36e   : > { %v2168_v46 = vpop.eup %2167 }
 0x36f   : > { %v771_v47 = vsel %vm718_vm2, %v2168_v46, 0.0 }
 0x370   : > { %772 = vadd.xlane.f32.xlu1 %v771_v47 }
 0x381   : > { %779 = vrot.lane.b32.xlu1 %v3014_v50, %s2553_s28 }
 0x385   : > { %895 = vrot.lane.b32.xlu1 %v3014_v50, %s2554_s16  ;;  %s3265_s16 = sld [smem:[#allocation35_spill]] }
 0x389   : > { %1040 = vrot.lane.b32.xlu1 %v2986_v20, %s2555_s30 }
 0x38d   : > { %1038 = vrot.lane.b32.xlu1 %v2988_v24, %s2555_s30  ;;  %s3141_s30 = scalar_lea.hbm %s3265_s16, %s1877_s17 }
 0x3d2   : > { %v884_v51 = vpop.xlane.xlu1 %883 }
 0x3d3   : > { %v885_v52 = vsub.f32 %v877_v38, %v884_v51 }
 0x3d5   : > { %v886_v53 = vmul.f32 1.442695, %v885_v52 }
 0x3d7   : > { %2169 = vpow2.f32 %v886_v53 }
 0x3e1   : > { %v2170_v54 = vpop.eup %2169 }
 0x3e2   : > { %v888_v55 = vsel %vm718_vm2, %v2170_v54, 0.0 }
 0x3e3   : > { %889 = vadd.xlane.f32.xlu0 %v888_v55 }
 0x3f9   : > { %1101 = vrot.lane.b32.xlu0 %v3014_v50, %s2556_s26  ;;  %s1612_s26 = scalar_lea.sflag [#allocation18], %s2915_s19 }
 0x3fd   : > { %v773_v56 = vpop.xlane.xlu1 %772 }
 0x3fe   : > { %2171 = vrcp.f32 %v773_v56 }
 0x401   : > { %v780_v57 = vpop.permute.xlu1 %779 }
 0x402   : > { %v786_v58 = vsel %vm784_vm3, %v780_v57, 0 }
 0x403   : > { %1941 = vmatpush3.bf16.msra.mxu1 %v786_v58 }
 0x404   : > { %1952 = vmatprep.subr.bf16.mxu1 %v2549_v0 }
 0x405   : > { %v896_v61 = vpop.permute.xlu1 %895 }
 0x406   : > { %v901_v63 = vsel %vm784_vm3, %v896_v61, 0 }
 0x408   : > { %v2172_v59 = vpop.eup %2171 }
 0x409   : > { %v3024_v60 = vmul.f32 %v2172_v59, %v2168_v46  ;;  %v1041_v18 = vpop.permute.xlu1 %1040 }
 0x40a   : > { %v1046_v25 = vsel %vm718_vm2, %v1041_v18, 0 }
 0x40b   : > { %v777_v62 = vpack.c.bf16 %v3024_v60, %v3024_v60 }
 0x40d   : > { %1943 = vmatmul.mubr.msk.bf16.vlgmr.msra.gmra.mrb[4].mxu1 %vm718_vm2, %v777_v62  ;;  %v1039_v27 = vpop.permute.xlu1 %1038 }
 0x40e   : > { %1953 = vmatpush3.bf16.msra.mxu1 %v901_v63  ;;  %1954 = vmatprep.mubr.msk.bf16.mxu1 %vm2550_vm0, %v2549_v0 }
 0x40f   : > { %1964 = vmatprep.subr.bf16.mxu1 %v2549_v0 }
 0x470   : > { %v890_v3 = vpop.xlane.xlu0 %889 }
 0x471   : > { %2173 = vrcp.f32 %v890_v3 }
 0x474   : > { %v1102_v11 = vpop.permute.xlu0 %1101 }
 0x475   : > { %v1107_v16 = vsel %vm784_vm3, %v1102_v11, 0 }
 0x47b   : > { %v2174_v4 = vpop.eup %2173 }
 0x47c   : > { %v892_v7 = vmul.f32 %v2174_v4, %v2170_v54 }
 0x47e   : > { %v894_v9 = vpack.c.bf16 %v892_v7, %v892_v7  ;;  %v893_v52 = vadd.f32 %v892_v7, %v3024_v60 }
 0x480   : > { %1955 = vmatmul.mubr.msk.bf16.vlgmr.msra.gmra.mrb[8].mxu1 %vm718_vm2, %v894_v9 }
 0x481   : > { %1965 = vmatpush3.bf16.msra.mxu1 %v996_v10  ;;  %1966 = vmatprep.mubr.msk.bf16.mxu1 %vm2550_vm0, %v2549_v0 }
 0x482   : > { %1976 = vmatprep.subr.bf16.mxu1 %v2549_v0 }
 0x4e0   : > { %v822_v12 = vpop.f32.mrb[4].mxu1 }
 0x4e1   : > { %v828_v13 = vpack.c.bf16 %v822_v12, %v822_v12  ;;  %v1944_v14 = vpop.f32.mrb[5].mxu1 }
 0x4e2   : > { %v825_v15 = vpop.f32.mrb[6].mxu1  ;;  %v1312_v14 = vld [vmem:[#allocation11 + $0xc] sm:$0xf] }
 0x4e3   : > { %v1945_v17 = vpop.f32.mrb[7].mxu1  ;;  %1967 = vmatmul.mubr.msk.bf16.vlgmr.msra.gmra.mrb[12].mxu1 %vm718_vm2, %v828_v13 }
 0x4e4   : > { %1977 = vmatpush3.bf16.msra.mxu1 %v1107_v16  ;;  %1978 = vmatprep.mubr.msk.bf16.mxu1 %vm2550_vm0, %v2549_v0 }
 0x4e5   : > { %1988 = vmatprep.subr.bf16.mxu1 %v2549_v0 }
 0x553   : > { %v937_v19 = vpop.f32.mrb[8].mxu1 }
 0x554   : > { %v943_v21 = vpack.c.bf16 %v937_v19, %v937_v19  ;;  %v1956_v22 = vpop.f32.mrb[9].mxu1 }
 0x555   : > { %v940_v23 = vpop.f32.mrb[10].mxu1 }
 0x556   : > { %v1957_v26 = vpop.f32.mrb[11].mxu1  ;;  %1961 = vmatmul.mubr.msk.bf16.vlgmr.msra.gmra.mrb[12].mxu0 %vm718_vm2, %v943_v21 }
 0x557   : > { %1971 = vmatpush3.bf16.xpose.msra.mxu0 %v1046_v25  ;;  %1972 = vmatprep.mubr.msk.bf16.mxu0 %vm2550_vm0, %v2549_v0 }
 0x558   : > { %1982 = vmatprep.subr.bf16.mxu0 %v2549_v0 }
 0x55e   : > { %1973 = vmatmul.mubr.msk.bf16.vlgmr.msra.gmra.mrb[16].mxu0 %vm718_vm2, %v1039_v27 }
 0x55f   : > { %1984 = vmatprep.mubr.msk.bf16.mxu0 %vm2550_vm0, %v2549_v0 }
 0x5b6   : > { %v1032_v28 = vpop.f32.mrb[12].mxu1 }
 0x5b7   : > { %v1968_v29 = vpop.f32.mrb[13].mxu1 }
 0x5b8   : > { %v1035_v31 = vpop.f32.mrb[14].mxu1 }
 0x5b9   : > { %v1969_v32 = vpop.f32.mrb[15].mxu1 }
 0x629   : > { %v986_v33 = vpop.f32.mrb[12].mxu0 }
 0x62a   : > { %v3053_v34 = vadd.f32 %v1032_v28, %v986_v33  ;;  %v1962_v35 = vpop.f32.mrb[13].mxu0 }
 0x62b   : > { %v989_v36 = vpop.f32.mrb[14].mxu0  ;;  %v1860_v35 = vld [vmem:[%s3263_s7 + $0x3] ss:$0 sm:$0xff] }
 0x62c   : > { %v1963_v37 = vpop.f32.mrb[15].mxu0 }
 0x631   : > { %v1082_v38 = vpop.f32.mrb[16].mxu0 }
 0x632   : > { %v1083_v39 = vadd.f32 %v1082_v38, %v3007_v30  ;;  %v1974_v40 = vpop.f32.mrb[17].mxu0 }
 0x633   : > { %v1085_v41 = vpop.f32.mrb[18].mxu0 }
 0x634   : > { %v1975_v42 = vpop.f32.mrb[19].mxu0  ;;  %v1088_v43 = vsel %vm718_vm2, %v1083_v39, -inf }
 0x635   : > { %1089 = vmax.xlane.f32.xlu1 %v1088_v43 }
 0x6c2   : > { %v1090_v44 = vpop.xlane.xlu1 %1089 }
 0x6c3   : > { %v1091_v45 = vsub.f32 %v1083_v39, %v1090_v44 }
 0x6c5   : > { %v1092_v46 = vmul.f32 1.442695, %v1091_v45 }
 0x6c7   : > { %2175 = vpow2.f32 %v1092_v46 }
 0x6d1   : > { %v2176_v47 = vpop.eup %2175 }
 0x6d2   : > { %v1094_v48 = vsel %vm718_vm2, %v2176_v47, 0.0 }
 0x6d3   : > { %1095 = vadd.xlane.f32.xlu0 %v1094_v48 }
 0x6e9   : > { %1201 = vrot.lane.b32.xlu0 %v2986_v20, %s2557_s6 }
 0x6ed   : > { %1199 = vrot.lane.b32.xlu0 %v2988_v24, %s2557_s6  ;;  %v1151_v24 = vld [vmem:[#allocation11 + $0x8] sm:$0xf]  ;;  %s2419_s6 = scalar_lea.vmem %s1639_s29, 128 }
 0x6ee   : > { %v1156_v58 = vsel %vm784_vm3, %v1151_v24, 0  ;;  %p2420_p13 = scmp.ne.s32.totalorder %s1639_s29, %s2419_s6 }
 0x6ef   : > { %1983 = vmatpush3.bf16.msra.mxu0 %v1156_v58 }
 0x6f0   : > { %1994 = vmatprep.subr.bf16.mxu0 %v2549_v0  ;;  %p2421_p10 = pnand %p2420_p13, %p3266_p0 }
 0x6f2   : > { %p2422_p11 = pneg %p2421_p10 }
 0x760   : > { %v1096_v49 = vpop.xlane.xlu0 %1095 }
 0x761   : > { %2177 = vrcp.f32 %v1096_v49 }
 0x764   : > { %v1202_v54 = vpop.permute.xlu0 %1201 }
 0x765   : > { %v1207_v57 = vsel %vm718_vm2, %v1202_v54, 0 }
 0x768   : > { %v1200_v20 = vpop.permute.xlu0 %1199 }
 0x76b   : > { %v2178_v51 = vpop.eup %2177 }
 0x76c   : > { %v1098_v53 = vmul.f32 %v2178_v51, %v2176_v47  ;;  %v2163_v51 = vld [vmem:[#allocation13] sm:$0xff]  }
 0x76e   : > { %v1099_v55 = vadd.f32 %v1098_v53, %v893_v52  ;;  %v1100_v56 = vpack.c.bf16 %v1098_v53, %v1098_v53  ;;  %v2164_v52 = vld [vmem:[#allocation13 + $0x8] sm:$0xff]  }
 0x770   : > { %1979 = vmatmul.mubr.msk.bf16.vlgmr.msra.gmra.mrb[16].mxu1 %vm718_vm2, %v1100_v56 }
 0x771   : > { %1989 = vmatpush3.bf16.xpose.msra.mxu1 %v1207_v57  ;;  %1990 = vmatprep.mubr.msk.bf16.mxu1 %vm2550_vm0, %v2549_v0  ;;  %v1862_v57 = vld [vmem:[%s3263_s7 + $0x5] ss:$0 sm:$0xff] }
 0x772   : > { %2000 = vmatprep.subr.bf16.mxu1 %v2549_v0 }
 0x778   : > { %1991 = vmatmul.mubr.msk.bf16.vlgmr.msra.gmra.mrb[20].mxu1 %vm718_vm2, %v1200_v20 }
 0x779   : > { %2002 = vmatprep.mubr.msk.bf16.mxu1 %vm2550_vm0, %v2549_v0 }
 0x843   : > { %v1143_v59 = vpop.f32.mrb[16].mxu1 }
 0x844   : > { %v1149_v60 = vpack.c.bf16 %v1143_v59, %v1143_v59  ;;  %v1980_v61 = vpop.f32.mrb[17].mxu1  ;;  %v2165_v59 = vld [vmem:[#allocation14] sm:$0xff]  }
 0x845   : > { %v1146_v62 = vpop.f32.mrb[18].mxu1  ;;  %v1863_v61 = vld [vmem:[%s3263_s7 + $0x6] ss:$0 sm:$0xff] }
 0x846   : > { %v1981_v63 = vpop.f32.mrb[19].mxu1  ;;  %1985 = vmatmul.mubr.msk.bf16.vlgmr.msra.gmra.mrb[20].mxu0 %vm718_vm2, %v1149_v60  ;;  %v2166_v60 = vld [vmem:[#allocation14 + $0x8] sm:$0xff]  }
 0x847   : > { %1996 = vmatprep.mubr.msk.bf16.mxu0 %vm2550_vm0, %v2549_v0 }
 0x84b   : > { %v1243_v1 = vpop.f32.mrb[20].mxu1 }
 0x84c   : > { %v1244_v2 = vadd.f32 %v1243_v1, %v3007_v30  ;;  %v1992_v3 = vpop.f32.mrb[21].mxu1  ;;  %v1317_v30 = vsel %vm784_vm3, %v1312_v14, 0 }
 0x84d   : > { %v1246_v4 = vpop.f32.mrb[22].mxu1  ;;  %2001 = vmatpush3.bf16.msra.mxu1 %v1317_v30 }
 0x84e   : > { %v1993_v5 = vpop.f32.mrb[23].mxu1  ;;  %v1249_v7 = vsel %vm718_vm2, %v1244_v2, -inf  ;;  %2014 = vmatprep.subr.bf16.mxu1 %v2549_v0 }
 0x84f   : > { %1250 = vmax.xlane.f32.xlu0 %v1249_v7  ;;  %v1867_v7 = vld [vmem:[%s3263_s7 + $0x7] ss:$0 sm:$0xff] }
 0x8dc   : > { %v1251_v9 = vpop.xlane.xlu0 %1250 }
 0x8dd   : > { %v1252_v10 = vsub.f32 %v1244_v2, %v1251_v9 }
 0x8df   : > { %v1253_v11 = vmul.f32 1.442695, %v1252_v10 }
 0x8e1   : > { %2179 = vpow2.f32 %v1253_v11 }
 0x8eb   : > { %v2180_v12 = vpop.eup %2179 }
 0x8ec   : > { %v1255_v13 = vsel %vm718_vm2, %v2180_v12, 0.0 }
 0x8ed   : > { %1256 = vadd.xlane.f32.xlu1 %v1255_v13 }
 0x8fe   : > { %1262 = vrot.lane.b32.xlu1 %v3014_v50, %s2558_s3  ;;  %s2560_s3 = smov [#allocation17]  }
 0x8ff   : > { %s2423_s12 = sshll.u32 %s2560_s3, 4  ;;  %s2424_s12 = int_to_ptr.vmem [resolvable:$false] %s2423_s12 }
 0x900   : > { %s2425_s18 = scalar_lea.vmem %s2424_s12, 256  ;;  %p2426_p9 = scmp.lt.s32.totalorder %s1639_s29, %s2424_s12 }
 0x901   : > { %p2427_p6 = scmp.lt.s32.totalorder %s2425_s18, %s2419_s6 }
 0x903   : > { %p2428_p2 = por %p2427_p6, %p2426_p9 }
 0x905   : > { %p2429_p8 = pnand %p2428_p2, %p2422_p11 }
 0x919   : > { %v1192_v15 = vpop.f32.mrb[20].mxu0 }
 0x91a   : > { %v1198_v16 = vadd.f32 %v1192_v15, %v3053_v34  ;;  %v1986_v17 = vpop.f32.mrb[21].mxu0 }
 0x91b   : > { %v1195_v18 = vpop.f32.mrb[22].mxu0 }
 0x91c   : > { %v1987_v19 = vpop.f32.mrb[23].mxu0 }
 0x91d   : > { %v570_v19 = vld [vmem:[%s3263_s7 + $0xa] sm:$0x1] }
 0x97a   : > { %v1257_v21 = vpop.xlane.xlu1 %1256 }
 0x97b   : > { %2181 = vrcp.f32 %v1257_v21  ;;  %v2559_v21 = vmov 0  }
 0x97c   : > { %2158 = vset.pattern.permute.xlu0 %v2559_v21 }
 0x97e   : > { %v1263_v22 = vpop.permute.xlu1 %1262 }
 0x97f   : > { %v1268_v23 = vsel %vm784_vm3, %v1263_v22, 0 }
 0x980   : > { %1995 = vmatpush3.bf16.msra.mxu0 %v1268_v23 }
 0x981   : > { %2006 = vmatprep.subr.bf16.mxu0 %v2549_v0 }
 0x985   : > { %v2182_v50 = vpop.eup %2181 }
 0x986   : > { %v1259_v25 = vmul.f32 %v2182_v50, %v2180_v12 }
 0x988   : > { %v1260_v26 = vadd.f32 %v1259_v25, %v1099_v55  ;;  %v1261_v27 = vpack.c.bf16 %v1259_v25, %v1259_v25  ;;  %v1861_v55 = vld [vmem:[%s3263_s7 + $0x4] ss:$0 sm:$0xff] }
 0x98a   : > { %1997 = vmatmul.mubr.msk.bf16.vlgmr.msra.gmra.mrb[24].mxu0 %vm718_vm2, %v1261_v27  ;;  %v1605_v28 = vmul.f32 0.25, %v1260_v26  ;;  %v1871_v26 = vld [vmem:[%s3263_s7 + $0x8] ss:$0 sm:$0xff] }
 0x98b   : > { %2010 = vmatprep.mubr.msk.bf16.mxu0 %vm2550_vm0, %v2549_v0  ;;  %2007 = vmatpush3.bf16.msra.mxu0 %v2163_v51 }
 0x98c   : > { %1606 = vst.msk [vmem:[%s558_s11] sm:$0xff] %vm718_vm2, %v1605_v28  ;;  %2008 = vmatprep.subr.bf16.mxu0 %v2549_v0  ;;  %v1872_v28 = vld [vmem:[%s3263_s7 + $0x9] ss:$0 sm:$0xff] }
 0x98f   : > { %2009 = vmatpush3.bf16.msra.mxu0 %v2164_v52 }
 0x990   : > { %2022 = vmatprep.subr.bf16.mxu0 %v2549_v0 }
 0xa5d   : > { %v1304_v29 = vpop.f32.mrb[24].mxu0 }
 0xa5e   : > { %v1310_v31 = vpack.c.bf16 %v1304_v29, %v1304_v29  ;;  %v1998_v32 = vpop.f32.mrb[25].mxu0 }
 0xa5f   : > { %v1307_v33 = vpop.f32.mrb[26].mxu0 }
 0xa60   : > { %v1999_v34 = vpop.f32.mrb[27].mxu0  ;;  %2003 = vmatmul.mubr.msk.bf16.vlgmr.msra.gmra.mrb[24].mxu1 %vm718_vm2, %v1310_v31 }
 0xa61   : > { %2018 = vmatprep.mubr.msk.bf16.mxu1 %vm2550_vm0, %v2549_v0  ;;  %2015 = vmatpush3.bf16.msra.mxu1 %v2165_v59  ;;  %v1544_v34 = vld [vmem:[%s3264_s14] sm:$0x1] }
 0xa62   : > { %2016 = vmatprep.subr.bf16.mxu1 %v2549_v0 }
 0xa65   : > { %2017 = vmatpush3.bf16.msra.mxu1 %v2166_v60 }
 0xb33   : > { %v1353_v36 = vpop.f32.mrb[24].mxu1 }
 0xb34   : > { %v1359_v37 = vadd.f32 %v1353_v36, %v1198_v16  ;;  %v2004_v38 = vpop.f32.mrb[25].mxu1 }
 0xb35   : > { %v1356_v39 = vpop.f32.mrb[26].mxu1 }
 0xb36   : > { %v1364_v40 = vadd.f32 %v1860_v35, %v1359_v37  ;;  %v2005_v41 = vpop.f32.mrb[27].mxu1 }
 0xb38   : > { %v1365_v42 = vadd.f32 %v1364_v40, %v2962_v6 }
 0xb3a   : > { %v1366_v43 = vadd.f32 %v1365_v42, %v2966_v8 }
 0xb3c   : > { %v1367_v44 = vsel %vm598_vm1, %v1366_v43, 0.0 }
 0xb3d   : > { %1368 = vadd.xlane.f32.xlu1 %v1367_v44 }
 0xbca   : > { %v1369_v45 = vpop.xlane.xlu1 %1368 }
 0xbcb   : > { %v1371_v46 = vmul.f32 0.03125, %v1369_v45 }
 0xbcd   : > { %v1372_v47 = vsub.f32 %v1366_v43, %v1371_v46 }
 0xbcf   : > { %v1373_v48 = vmul.f32 %v1372_v47, %v1372_v47 }
 0xbd1   : > { %v1374_v49 = vsel %vm598_vm1, %v1373_v48, 0.0 }
 0xbd2   : > { %1375 = vadd.xlane.f32.xlu0 %v1374_v49 }
 0xc5f   : > { %v1376_v6 = vpop.xlane.xlu0 %1375 }
 0xc60   : > { %v1377_v8 = vmul.f32 0.03125, %v1376_v6 }
 0xc62   : > { %v1378_v53 = vadd.f32 1e-05, %v1377_v8 }
 0xc64   : > { %2183 = vrsqrt.f32 %v1378_v53 }
 0xc6e   : > { %v2184_v54 = vpop.eup %2183 }
 0xc6f   : > { %v1380_v56 = vmul.f32 %v2184_v54, %v1372_v47 }
 0xc71   : > { %v1385_v20 = vmul.f32 %v1861_v55, %v1380_v56 }
 0xc73   : > { %v1390_v24 = vadd.f32 %v1862_v57, %v1385_v20 }
 0xc75   : > { %v1391_v58 = vpack.c.bf16 %v1390_v24, %v1390_v24 }
 0xc77   : > { %2011 = vmatmul.mubr.msk.bf16.vlgmr.msra.gmra.mrb[28].mxu0 %vm598_vm1, %v1391_v58 }
 0xc78   : > { %2024 = vmatprep.mubr.msk.bf16.mxu0 %vm2550_vm0, %v2549_v0 }
 0xd4a   : > { %v1449_v62 = vpop.f32.mrb[28].mxu0 }
 0xd4b   : > { %v1450_v63 = vadd.f32 %v1863_v61, %v1449_v62  ;;  %v2012_v1 = vpop.f32.mrb[29].mxu0 }
 0xd4c   : > { %v1452_v2 = vpop.f32.mrb[30].mxu0 }
 0xd4d   : > { %v1455_v3 = vmax.f32 %v1450_v63, 0.0  ;;  %v2013_v4 = vpop.f32.mrb[31].mxu0 }
 0xd4f   : > { %v1456_v5 = vpack.c.bf16 %v1455_v3, %v1455_v3 }
 0xd51   : > { %2019 = vmatmul.mubr.msk.bf16.vlgmr.msra.gmra.mrb[28].mxu1 %vm598_vm1, %v1456_v5 }
 0xe24   : > { %v1514_v0 = vpop.f32.mrb[28].mxu1 }
 0xe25   : > { %v1515_v9 = vadd.f32 %v1867_v7, %v1514_v0  ;;  %v2020_v10 = vpop.f32.mrb[29].mxu1 }
 0xe26   : > { %v1517_v11 = vpop.f32.mrb[30].mxu1 }
 0xe27   : > { %v2021_v12 = vpop.f32.mrb[31].mxu1  ;;  %v1520_v13 = vadd.f32 %v1515_v9, %v1390_v24 }
 0xe29   : > { %v1521_v14 = vsel %vm598_vm1, %v1520_v13, 0.0 }
 0xe2a   : > { %1522 = vadd.xlane.f32.xlu0 %v1521_v14 }
 0xeb7   : > { %v1523_v30 = vpop.xlane.xlu0 %1522 }
 0xeb8   : > { %v1524_v15 = vmul.f32 0.03125, %v1523_v30 }
 0xeba   : > { %v1525_v16 = vsub.f32 %v1520_v13, %v1524_v15 }
 0xebc   : > { %v1526_v17 = vmul.f32 %v1525_v16, %v1525_v16 }
 0xebe   : > { %v1527_v18 = vsel %vm598_vm1, %v1526_v17, 0.0 }
 0xebf   : > { %1528 = vadd.xlane.f32.xlu0 %v1527_v18 }
 0xed5   : > { %1548 = vperm.xlu0 %2158, %v570_v19  }
 0xf4c   : > { %v1529_v22 = vpop.xlane.xlu0 %1528 }
 0xf4d   : > { %v1530_v23 = vmul.f32 0.03125, %v1529_v22 }
 0xf4f   : > { %v1531_v50 = vadd.f32 1e-05, %v1530_v23 }
 0xf51   : > { %2185 = vrsqrt.f32 %v1531_v50 }
 0xf5b   : > { %v2186_v25 = vpop.eup %2185 }
 0xf5c   : > { %v1533_v27 = vmul.f32 %v2186_v25, %v1525_v16 }
 0xf5e   : > { %v1538_v29 = vmul.f32 %v1871_v26, %v1533_v27 }
 0xf60   : > { %v1543_v31 = vadd.f32 %v1872_v28, %v1538_v29 }
 0xf62   : > { %v1545_v32 = vpack.c.bf16 %v1543_v31, %v1543_v31 }
 0xf64   : > { %v1555_v33 = vsel %vm598_vm1, %v1545_v32, 0 }
 0xf65   : > { %2023 = vmatpush3.bf16.xpose.msra.mxu0 %v1555_v33 }
 0xf6c   : > { %2025 = vmatmul.mubr.msk.bf16.vlgmr.msra.gmra.mrb[32].mxu0 %vm598_vm1, %v1544_v34 }
 0xf6d   : > { %2432 = shalt.err (!%p2429_p8)
}
 0xf6e   : > { %s2433_s4 = scalar_lea.hbm %s3141_s30, 128  ;;  %s2437_s20 = scalar_lea.hbm %s3265_s16, 256 }
 0xf6f   : > { %p2434_p12 = scmp.ne.s32.totalorder %s3141_s30, %s2433_s4  ;;  %p2438_p4 = scmp.lt.u32.totalorder %s3141_s30, %s3265_s16 }
 0xf70   : > { %p2439_p1 = scmp.lt.u32.totalorder %s2437_s20, %s2433_s4  ;;  %p2441_p13 = scmp.lt.u32.totalorder %s2433_s4, %s3141_s30 }
 0xf71   : > { %p2435_p5 = pnand %p2434_p12, %p3266_p0 }
 0xf72   : > { %p2440_p3 = por %p2439_p1, %p2438_p4 }
 0xf73   : > { %p2436_p7 = pneg %p2435_p5 }
 0xf74   : > { %p2442_p10 = por %p2441_p13, %p2440_p3 }
 0xf76   : > { %p2443_p11 = pnand %p2442_p10, %p2436_p7 }
 0xf78   : > { %2446 = shalt.err (!%p2443_p11)
}
 0xf79   : > { %2057 = dma.vmem_to_hbm [thread:$0]  (%p3266_p0), %s1639_s29, 128, %s3141_s30, %s1612_s26   ;;  %v1549_v35 = vpop.permute.xlu0 %1548  ;;  %vm1603_vm4 = vcmask 57344  }
 0xf7a   : > { %s1876_s13 = sshll.u32 %s2648_s27, 4  ;;  %s551_s28 = scalar_lea.vmem [#allocation16], %s2915_s19 }
 0xf7b   : > { %s1625_s6 = sshll.u32 %s551_s28, 4  ;;  %s3267_s29 = sld [smem:[#allocation34_spill]]  ;;  %s3168_s6 = int_to_ptr.vmem [resolvable:$true] %s1625_s6 }
 0xf7c   : > { %s1608_s26 = scalar_lea.sflag [#allocation4], %s2915_s19  ;;  %s2447_s18 = scalar_lea.vmem %s3168_s6, 16 }
 0xf7d   : > { %p2448_p9 = scmp.ne.s32.totalorder %s3168_s6, %s2447_s18  ;;  %s2561_s27 = smov [#allocation16]  }
 0xf7e   : > { %s2451_s4 = sshll.u32 %s2561_s27, 4  ;;  %s2452_s4 = int_to_ptr.vmem [resolvable:$false] %s2451_s4 }
 0xf7f   : > { %p2449_p6 = pnand %p2448_p9, %p3266_p0  ;;  %s2453_s11 = scalar_lea.vmem %s2452_s4, 32 }
 0xf80   : > { %p2454_p8 = scmp.lt.s32.totalorder %s3168_s6, %s2452_s4  ;;  %p2455_p12 = scmp.lt.s32.totalorder %s2453_s11, %s2447_s18 }
 0xf81   : > { %s3166_s30 = scalar_lea.hbm %s3267_s29, %s1876_s13  ;;  %p2450_p2 = pneg %p2449_p6 }
 0xf82   : > { %p2456_p5 = por %p2455_p12, %p2454_p8 }
 0xf84   : > { %p2457_p7 = pnand %p2456_p5, %p2450_p2 }
0x103f   : > { %v1591_v36 = vpop.f32.mrb[32].mxu0 }
0x1040   : > { %v1592_v37 = vadd.f32 %v1591_v36, %v1549_v35  ;;  %v2026_v38 = vpop.f32.mrb[33].mxu0 }
0x1041   : > { %v1594_v39 = vpop.f32.mrb[34].mxu0 }
0x1042   : > { %v1874_v40 = vmul.f32 -1.442695, %v1592_v37  ;;  %v2027_v41 = vpop.f32.mrb[35].mxu0 }
0x1044   : > { %2187 = vpow2.f32 %v1874_v40 }
0x104e   : > { %v2188_v42 = vpop.eup %2187 }
0x104f   : > { %v1600_v43 = vadd.f32 1.0, %v2188_v42 }
0x1051   : > { %2189 = vrcp.f32 %v1600_v43 }
0x105b   : > { %v2190_v44 = vpop.eup %2189 }
0x105c   : > { %1604 = vst.msk [vmem:[%s551_s28] sm:$0x1] %vm1603_vm4, %v2190_v44 }
0x105d   : > { %2460 = shalt.err (!%p2457_p7)
}
0x105e   : > { %s2461_s19 = scalar_lea.hbm %s3166_s30, 16  ;;  %s2465_s14 = scalar_lea.hbm %s3267_s29, 32 }
0x105f   : > { %p2462_p4 = scmp.ne.s32.totalorder %s3166_s30, %s2461_s19  ;;  %p2466_p13 = scmp.lt.u32.totalorder %s3166_s30, %s3267_s29 }
0x1060   : > { %p2467_p10 = scmp.lt.u32.totalorder %s2465_s14, %s2461_s19  ;;  %p2469_p9 = scmp.lt.u32.totalorder %s2461_s19, %s3166_s30 }
0x1061   : > { %p2463_p1 = pnand %p2462_p4, %p3266_p0 }
0x1062   : > { %p2468_p11 = por %p2467_p10, %p2466_p13 }
0x1063   : > { %p2464_p3 = pneg %p2463_p1 }
0x1064   : > { %p2470_p6 = por %p2469_p9, %p2468_p11 }
0x1066   : > { %p2471_p2 = pnand %p2470_p6, %p2464_p3 }
0x1068   : > { %2474 = shalt.err (!%p2471_p2)
}
0x1069   : > { %2056 = dma.vmem_to_hbm [thread:$0]  (%p3266_p0), %s3168_s6, 16, %s3166_s30, %s1608_s26  }
0x106a PF: > { %s1650_s28 = sand.u32 1, %s2525_s21   ;;  %p3268_p8 = scmp.ne.s32.totalorder %s3251_s9, 0 }
0x106b   : > { %p3269_p12 = scmp.ge.s32.totalorder %s2537_s24, 2  ;;  %s1651_s3 = scalar_lea.sflag [#allocation4], %s1650_s28 }
0x106d   : > { %p2087_p5 = pnand %p3269_p12, %p3268_p8 }
0x106f   : > { %2516 = dma.done.wait (!%p2087_p5), %s1651_s3, 16  }
0x1070   : > { %2518 = vsyncadd (!%p2087_p5), %s1651_s3, 4294967280  ;;  %s1659_s12 = scalar_lea.sflag [#allocation18], %s1650_s28 }
0x1071   : > { %2520 = dma.done.wait (!%p2087_p5), %s1659_s12, 128  }
0x1072   : > { %2522 = vsyncadd (!%p2087_p5), %s1659_s12, 4294967168  ;;  %p35_p0 = scmp.ge.s32.totalorder %s2808_s25, 4   ;;  %s3270_s21 = smov %s2529_s22 }
0x1073   : > { %s3271_s22 = smov %s2533_s23  ;;  %s3272_s23 = smov %s2819_s15 }
0x1074   : > { %s3273_s24 = smov %s2808_s25  ;;  %37 = sbr.rel (!%p35_p0) target bundleno = 22 (0x16), region = 166 }
0x107b   :  { %1664 = vsyncpa [#allocation3], 1 }
0x107c   :  { %1666 = vsyncpa [#allocation3 + $0x1], 1 }
0x107d   :  { %1667 = vsyncpa [#allocation6], 1 }
0x107e   :  { %1669 = vsyncpa [#allocation6 + $0x1], 1 }
0x107f   :  { %1670 = vsyncpa [#allocation9], 1 }
0x1080   :  { %1671 = vsyncpa [#allocation12], 1 }
0x1081   :  { %1672 = vsyncpa [#allocation15], 1 }
0x1082   :  { %1673 = vsyncpa [#allocation4], 1 }
0x1083   :  { %1675 = vsyncpa [#allocation4 + $0x1], 1 }
0x1084   :  { %1676 = vsyncpa [#allocation18], 1 }
0x1085   :  { %1678 = vsyncpa [#allocation18 + $0x1], 1 }

</bundles_post_ra>
